<compile_context>
chip_gen: v7x
topology: tpu7x:2x2x1
jax: 0.10.0
libtpu: 0.0.40
codegen_flags: <defaults>
</compile_context>

<pallas_src>
import numpy as np

import jax
import jax.numpy as jnp
from jax.experimental import pallas as pl
from jax.experimental.pallas import tpu as pltpu

BN_EPS = 1e-5
LEAKY_SLOPE = 0.3
# MXU-native dtype for the conv matmuls (per perf review). Everything statistical stays f32.
MATMUL_DTYPE = jnp.bfloat16


# --------------------------- in-kernel helpers ---------------------------

def _edge_masks(NL, L_per, P, C):
    """f32 0/1 validity masks for lane shifts, pre-broadcast to (C, NL).

    Built ONCE per resolution and shared by every conv at that resolution; convs multiply
    by a leading-row slice of these (replaces the per-tap select + zero splat)."""
    pos = jax.lax.broadcasted_iota(jnp.int32, (1, NL), 1) % L_per
    return {d: jnp.broadcast_to(((pos + d >= 0) & (pos + d < L_per)).astype(jnp.float32),
                                (C, NL))
            for d in range(-P, P + 1) if d != 0}


def _shift(x, d, masks):
    # s[:, p] = x[:, p + d] if p+d stays inside the same sample, else 0 (conv zero-pad).
    if d == 0:
        return x
    Ci, NL = x.shape
    z = jnp.zeros((Ci, abs(d)), x.dtype)
    if d > 0:
        s = jnp.concatenate([x[:, d:], z], axis=1)
    else:
        s = jnp.concatenate([z, x[:, :NL + d]], axis=1)
    return s * masks[d][:Ci, :]          # multiply by pre-broadcast 0/1 mask (no select)


def _conv1d(x, w_ref, bias, masks, K):
    """Conv1d(stride=1, pad=(K-1)//2) on the lane-dense (Ci, N*L) layout.

    Taps are folded into the contraction: shifted inputs are stacked into one (K*Ci, NL)
    im2col buffer and hit the MXU with ONE (Co, K*Ci) @ (K*Ci, NL) matmul.  For tiny Ci
    the matmul would be >96% MXU padding, so a VPU broadcast-FMA path is used instead."""
    Ci, NL = x.shape
    P = (K - 1) // 2
    shifted = [_shift(x, k - P, masks) for k in range(K)]       # K x (Ci, NL)
    w = w_ref[...]                                              # (Co, K*Ci)
    Co = w.shape[0]
    if Ci <= 4:
        acc = jnp.zeros((Co, NL), jnp.float32)
        for k in range(K):                                      # static unroll over taps
            for i in range(Ci):
                acc = acc + w[:, k * Ci + i:k * Ci + i + 1] * shifted[k][i:i + 1, :]
        return acc + bias
    xs = jnp.concatenate(shifted, axis=0)                       # (K*Ci, NL) im2col stack
    # bf16 operands, f32 accumulation (MXU-native path)
    return jnp.dot(w, xs.astype(w.dtype), preferred_element_type=jnp.float32) + bias


def _bn_leaky(v, gamma, beta):
    """Training-mode BatchNorm1d (biased stats over N*L per channel) + LeakyReLU(0.3).

    Two-pass (centered) variance avoids E[x^2]-E[x]^2 cancellation and the centered
    values are reused for the normalization itself."""
    C, NL = v.shape
    inv_n = 1.0 / NL
    mean = jnp.sum(v, axis=1, keepdims=True) * inv_n            # (C, 1)
    d = v - mean
    var = jnp.sum(d * d, axis=1, keepdims=True) * inv_n         # biased variance
    scale = gamma * jax.lax.rsqrt(var + BN_EPS)
    y = d * scale + beta
    return jnp.maximum(y, LEAKY_SLOPE * y)                      # LeakyReLU(0.3)


def _maxpool2(h, sel):
    """MaxPool1d(2) along the flattened lane axis.

    m = max(h, h shifted left by one lane) puts max(h[2j], h[2j+1]) at every even lane;
    ONE host-built 0/1 selection matmul downselects the even lanes.  Pool pairs never
    cross a sample boundary (L even) and odd lanes of m are discarded, so no masking is
    needed.  Kept in f32: a pure selection, so pooled values stay bit-exact."""
    hs = jnp.concatenate([h[:, 1:], h[:, :1]], axis=1)
    m = jnp.maximum(h, hs)
    return jnp.dot(m, sel, preferred_element_type=jnp.float32)  # (C, NL//2)


# ------------------------------- kernel ----------------------------------

def _make_kernel(*, depth, K, L, C1, C2, Cin):
    P = (K - 1) // 2

    def body(x, w_refs, vecs_ref, sel_ref, out_ref):
        NL = x.shape[1]

        def vec(idx, C):                      # packed per-channel vector -> (C, 1) f32
            return vecs_ref[0:C, idx:idx + 1]

        # ---- stem_1: (Conv1d -> BN -> LeakyReLU) x 2 at full resolution ----
        masks1 = _edge_masks(NL, L, P, max(C1, Cin))      # hoisted, shared by both convs
        h = _conv1d(x, w_refs[0], vec(0, C1), masks1, K)
        h = _bn_leaky(h, vec(1, C1), vec(2, C1))
        h = _conv1d(h, w_refs[1], vec(3, C1), masks1, K)
        h = _bn_leaky(h, vec(4, C1), vec(5, C1))

        # ---- MaxPool1d(2) ----
        h = _maxpool2(h, sel_ref[...])

        # ---- stem_2 (depth == 2): (Conv1d -> BN -> LeakyReLU) x 2 at half resolution ----
        if depth == 2:
            masks2 = _edge_masks(NL // 2, L // 2, P, C2)  # hoisted, shared by both convs
            h = _conv1d(h, w_refs[2], vec(6, C2), masks2, K)
            h = _bn_leaky(h, vec(7, C2), vec(8, C2))
            h = _conv1d(h, w_refs[3], vec(9, C2), masks2, K)
            h = _bn_leaky(h, vec(10, C2), vec(11, C2))

        out_ref[...] = h.astype(out_ref.dtype)

    if depth == 2:
        def kernel(x_ref, w1, w2, w3, w4, vecs_ref, sel_ref, out_ref):
            body(x_ref[...], (w1, w2, w3, w4), vecs_ref, sel_ref, out_ref)
    else:
        def kernel(x_ref, w1, w2, vecs_ref, sel_ref, out_ref):
            body(x_ref[...], (w1, w2), vecs_ref, sel_ref, out_ref)
    return kernel


# ------------------------------- wrapper ----------------------------------

def _padded_bytes(shape, dtype):
    """VMEM footprint of one 1-D/2-D array padded to (8, 128) tiles."""
    r = shape[-2] if len(shape) >= 2 else 1
    c = shape[-1]
    return (pl.cdiv(r, 8) * 8) * (pl.cdiv(c, 128) * 128) * np.dtype(dtype).itemsize


def xception_stem_forward(x, params, *, kernel_size=3, depth=2):
    N, Cin, L = x.shape
    assert L % 2 == 0
    K = kernel_size
    C1 = params['w1'].shape[0]
    C2 = params['w3'].shape[0] if depth == 2 else C1
    Cmax = max(C1, C2)
    NL = N * L

    # lane-dense activation layout: (channels, N*L); transposes stay outside the kernel
    x2 = jnp.transpose(x, (1, 0, 2)).reshape(Cin, NL).astype(jnp.float32)

    # conv weights flattened to (Co, K*Ci) (tap-major, channel-minor) to match the
    # in-kernel (K*Ci, NL) im2col stack; MXU convs (Ci > 4) are shipped in bf16.
    def prep_w(w):                                      # (Co, Ci, K) -> (Co, K*Ci)
        Co, Ci, Kw = w.shape
        wf = jnp.transpose(w, (0, 2, 1)).reshape(Co, Kw * Ci)
        return wf.astype(MATMUL_DTYPE if Ci > 4 else jnp.float32)

    groups = [('b1', 'g1', 'be1'), ('b2', 'g2', 'be2')]
    weights = [prep_w(params['w1']), prep_w(params['w2'])]
    if depth == 2:
        groups += [('b3', 'g3', 'be3'), ('b4', 'g4', 'be4')]
        weights += [prep_w(params['w3']), prep_w(params['w4'])]
    vec_list = [params[n] for grp in groups for n in grp]
    vecs = jnp.stack(
        [jnp.pad(v.astype(jnp.float32), (0, Cmax - v.shape[0])) for v in vec_list], axis=1)

    # host-built even-lane downselect matrix for the max-pool (no in-kernel iota/compare).
    # TODO(synk): replace this O(NL^2) matrix by a stride-2 lane slice / tiled downselect
    # for very large N*L; it is the only remaining quadratic term.
    sel = (jnp.arange(NL)[:, None] == 2 * jnp.arange(NL // 2)[None, :]).astype(jnp.float32)

    C_out = C2 if depth == 2 else C1
    L_out = L // 2
    out_shape = jax.ShapeDtypeStruct((C_out, N * L_out), jnp.float32)

    # generous flat-sum VMEM bound (padded inputs/outputs, double-buffer margin, live
    # activation temps), clamped to [32 MiB, 60 MiB] (<= smallest physical VMEM: v7x 64 MiB)
    io_bytes = (_padded_bytes(x2.shape, x2.dtype)
                + _padded_bytes(vecs.shape, vecs.dtype)
                + _padded_bytes(sel.shape, sel.dtype)
                + _padded_bytes(out_shape.shape, out_shape.dtype)
                + sum(_padded_bytes(w.shape, w.dtype) for w in weights))
    act_bytes = 4 * NL * (10 * max(C1, Cin)) + 4 * (NL // 2) * (12 * C2)
    vmem_limit = int(min(max(2 * (2 * io_bytes + act_bytes), 32 << 20), 60 << 20))

    kernel_fn = _make_kernel(depth=depth, K=K, L=L, C1=C1, C2=C2, Cin=Cin)
    vmem = pl.BlockSpec(memory_space=pltpu.MemorySpace.VMEM)
    n_in = 1 + len(weights) + 2
    out2 = pl.pallas_call(
        kernel_fn,
        out_shape=out_shape,
        in_specs=[vmem] * n_in,
        out_specs=vmem,
        compiler_params=pltpu.CompilerParams(vmem_limit_bytes=vmem_limit),
    )(x2, *weights, vecs, sel)

    # back to PyTorch NCL layout
    return jnp.transpose(out2.reshape(C_out, N, L_out), (1, 0, 2))


# -------------------- pure-JAX reference (independent) --------------------

def _ref_forward(x, p, *, kernel_size=3, depth=2):
    pad = (kernel_size - 1) // 2

    def conv(v, w, b):
        y = jax.lax.conv_general_dilated(v, w, (1,), [(pad, pad)],
                                         dimension_numbers=('NCW', 'OIW', 'NCW'))
        return y + b.reshape(1, -1, 1)

    def bn(v, g, b):
        mean = v.mean(axis=(0, 2), keepdims=True)
        var = ((v - mean) ** 2).mean(axis=(0, 2), keepdims=True)
        return (v - mean) / jnp.sqrt(var + BN_EPS) * g.reshape(1, -1, 1) + b.reshape(1, -1, 1)

    def act(v):
        return jnp.where(v >= 0, v, LEAKY_SLOPE * v)

    h = act(bn(conv(x, p['w1'], p['b1']), p['g1'], p['be1']))
    h = act(bn(conv(h, p['w2'], p['b2']), p['g2'], p['be2']))
    N, C, L = h.shape
    h = h.reshape(N, C, L // 2, 2).max(axis=3)       # MaxPool1d(2)
    if depth == 2:
        h = act(bn(conv(h, p['w3'], p['b3']), p['g3'], p['be3']))
        h = act(bn(conv(h, p['w4'], p['b4']), p['g4'], p['be4']))
    return h


# --------------------------------- main -----------------------------------

if __name__ == "__main__":
    # XceptionStemBlock(kernel=3, depth=2, max_dim=64, data_input_channel=1)
    kernel_size, depth = 3, 2
    Cin, C1, C2 = 1, 32, 64
    N, L = 2, 128

    key = jax.random.PRNGKey(0)
    ks = jax.random.split(key, 8)
    x = jax.random.normal(ks[0], (N, Cin, L), dtype=jnp.float32)

    def conv_w(k, co, ci):                           # normal_init: N(0, 0.05), bias = 0
        return 0.05 * jax.random.normal(k, (co, ci, kernel_size), dtype=jnp.float32)

    params = {
        'w1': conv_w(ks[1], C1, Cin), 'b1': jnp.zeros((C1,), jnp.float32),
        'g1': jnp.ones((C1,), jnp.float32), 'be1': jnp.zeros((C1,), jnp.float32),
        'w2': conv_w(ks[2], C1, C1), 'b2': jnp.zeros((C1,), jnp.float32),
        'g2': jnp.ones((C1,), jnp.float32), 'be2': jnp.zeros((C1,), jnp.float32),
        'w3': conv_w(ks[3], C2, C1), 'b3': jnp.zeros((C2,), jnp.float32),
        'g3': jnp.ones((C2,), jnp.float32), 'be3': jnp.zeros((C2,), jnp.float32),
        'w4': conv_w(ks[4], C2, C2), 'b4': jnp.zeros((C2,), jnp.float32),
        'g4': jnp.ones((C2,), jnp.float32), 'be4': jnp.zeros((C2,), jnp.float32),
    }

    out = xception_stem_forward(x, params, kernel_size=kernel_size, depth=depth)
    out = jax.block_until_ready(out)

    ref = _ref_forward(x, params, kernel_size=kernel_size, depth=depth)
    assert out.shape == (N, C2, L // 2), f"bad shape {out.shape}"
    # bf16 MXU operands (f32 accumulation) across three chained conv+BN layers give
    # ~1e-3..1e-2 absolute deviation vs the all-f32 reference; 5e-2 leaves ample margin.
    assert jnp.allclose(out, ref, rtol=5e-2, atol=5e-2), "Pallas kernel mismatch vs JAX reference"

    print("KERNEL_OK")
</pallas_src>

<mosaic_0001>
module attributes {stable_mosaic.version = 11 : i64} {
  func.func @kernel(%arg0: memref<1x256xf32, #tpu.memory_space<vmem>>, %arg1: memref<32x3xf32, #tpu.memory_space<vmem>>, %arg2: memref<32x96xbf16, #tpu.memory_space<vmem>>, %arg3: memref<64x96xbf16, #tpu.memory_space<vmem>>, %arg4: memref<64x192xbf16, #tpu.memory_space<vmem>>, %arg5: memref<64x12xf32, #tpu.memory_space<vmem>>, %arg6: memref<256x128xf32, #tpu.memory_space<vmem>>, %arg7: memref<64x128xf32, #tpu.memory_space<vmem>>) attributes {dimension_semantics = [], scalar_prefetch = 0 : i64, scratch_operands = 0 : i64, tpu.core_type = #tpu.core_type<tc>} {
    %c0 = arith.constant 0 : index
    %c0_0 = arith.constant 0 : index
    %0 = vector.load %arg0[%c0, %c0_0] : memref<1x256xf32, #tpu.memory_space<vmem>>, vector<1x256xf32>
    %1 = tpu.iota {dimensions = array<i32: 1>} : vector<1x256xi32>
    %c128_i32 = arith.constant 128 : i32
    %c0_i32 = arith.constant 0 : i32
    %2 = arith.cmpi eq, %c128_i32, %c0_i32 : i32
    %c1_i32 = arith.constant 1 : i32
    %3 = arith.select %2, %c1_i32, %c128_i32 : i32
    %4 = vector.broadcast %3 : i32 to vector<1x256xi32>
    %5 = arith.remsi %1, %4 : vector<1x256xi32>
    %c0_i32_1 = arith.constant 0 : i32
    %6 = vector.broadcast %c0_i32_1 : i32 to vector<1x256xi32>
    %7 = arith.cmpi ne, %5, %6 : vector<1x256xi32>
    %c0_i32_2 = arith.constant 0 : i32
    %8 = vector.broadcast %c0_i32_2 : i32 to vector<1x256xi32>
    %9 = arith.cmpi slt, %5, %8 : vector<1x256xi32>
    %c0_i32_3 = arith.constant 0 : i32
    %10 = arith.cmpi slt, %3, %c0_i32_3 : i32
    %11 = vector.broadcast %10 : i1 to vector<1x256xi1>
    %12 = vector.broadcast %11 : vector<1x256xi1> to vector<1x256xi1>
    %13 = arith.xori %9, %12 : vector<1x256xi1>
    %14 = arith.andi %13, %7 : vector<1x256xi1>
    %15 = vector.broadcast %3 : i32 to vector<1x256xi32>
    %16 = arith.addi %5, %15 : vector<1x256xi32>
    %17 = arith.select %14, %16, %5 : vector<1x256xi1>, vector<1x256xi32>
    %c-1_i32 = arith.constant -1 : i32
    %18 = vector.broadcast %c-1_i32 : i32 to vector<1x256xi32>
    %19 = arith.addi %17, %18 : vector<1x256xi32>
    %c0_i32_4 = arith.constant 0 : i32
    %20 = vector.broadcast %c0_i32_4 : i32 to vector<1x256xi32>
    %21 = arith.cmpi sge, %19, %20 : vector<1x256xi32>
    %c-1_i32_5 = arith.constant -1 : i32
    %22 = vector.broadcast %c-1_i32_5 : i32 to vector<1x256xi32>
    %23 = arith.addi %17, %22 : vector<1x256xi32>
    %c128_i32_6 = arith.constant 128 : i32
    %24 = vector.broadcast %c128_i32_6 : i32 to vector<1x256xi32>
    %25 = arith.cmpi slt, %23, %24 : vector<1x256xi32>
    %26 = arith.andi %21, %25 : vector<1x256xi1>
    %27 = arith.extui %26 : vector<1x256xi1> to vector<1x256xi32>
    %28 = arith.sitofp %27 : vector<1x256xi32> to vector<1x256xf32>
    %29 = vector.shape_cast %28 : vector<1x256xf32> to vector<1x256xf32>
    %30 = vector.broadcast %29 : vector<1x256xf32> to vector<32x256xf32>
    %c1_i32_7 = arith.constant 1 : i32
    %31 = vector.broadcast %c1_i32_7 : i32 to vector<1x256xi32>
    %32 = arith.addi %17, %31 : vector<1x256xi32>
    %c0_i32_8 = arith.constant 0 : i32
    %33 = vector.broadcast %c0_i32_8 : i32 to vector<1x256xi32>
    %34 = arith.cmpi sge, %32, %33 : vector<1x256xi32>
    %c1_i32_9 = arith.constant 1 : i32
    %35 = vector.broadcast %c1_i32_9 : i32 to vector<1x256xi32>
    %36 = arith.addi %17, %35 : vector<1x256xi32>
    %c128_i32_10 = arith.constant 128 : i32
    %37 = vector.broadcast %c128_i32_10 : i32 to vector<1x256xi32>
    %38 = arith.cmpi slt, %36, %37 : vector<1x256xi32>
    %39 = arith.andi %34, %38 : vector<1x256xi1>
    %40 = arith.extui %39 : vector<1x256xi1> to vector<1x256xi32>
    %41 = arith.sitofp %40 : vector<1x256xi32> to vector<1x256xf32>
    %42 = vector.shape_cast %41 : vector<1x256xf32> to vector<1x256xf32>
    %43 = vector.broadcast %42 : vector<1x256xf32> to vector<32x256xf32>
    %c0_11 = arith.constant 0 : index
    %c0_12 = arith.constant 0 : index
    %44 = vector.load %arg5[%c0_11, %c0_12] : memref<64x12xf32, #tpu.memory_space<vmem>>, vector<32x1xf32>
    %cst = arith.constant 0.000000e+00 : f32
    %45 = vector.broadcast %cst : f32 to vector<1x1xf32>
    %46 = vector.extract_strided_slice %0 {offsets = [0, 0], sizes = [1, 255], strides = [1, 1]} : vector<1x256xf32> to vector<1x255xf32>
    %47 = tpu.concatenate %45, %46 in 1 : vector<1x1xf32>, vector<1x255xf32> -> vector<1x256xf32>
    %48 = vector.extract_strided_slice %30 {offsets = [0, 0], sizes = [1, 256], strides = [1, 1]} : vector<32x256xf32> to vector<1x256xf32>
    %49 = arith.mulf %47, %48 : vector<1x256xf32>
    %cst_13 = arith.constant 0.000000e+00 : f32
    %50 = vector.broadcast %cst_13 : f32 to vector<1x1xf32>
    %51 = vector.extract_strided_slice %0 {offsets = [0, 1], sizes = [1, 255], strides = [1, 1]} : vector<1x256xf32> to vector<1x255xf32>
    %52 = tpu.concatenate %51, %50 in 1 : vector<1x255xf32>, vector<1x1xf32> -> vector<1x256xf32>
    %53 = vector.extract_strided_slice %43 {offsets = [0, 0], sizes = [1, 256], strides = [1, 1]} : vector<32x256xf32> to vector<1x256xf32>
    %54 = arith.mulf %52, %53 : vector<1x256xf32>
    %c0_14 = arith.constant 0 : index
    %c0_15 = arith.constant 0 : index
    %55 = vector.load %arg1[%c0_14, %c0_15] : memref<32x3xf32, #tpu.memory_space<vmem>>, vector<32x3xf32>
    %cst_16 = arith.constant 0.000000e+00 : f32
    %56 = vector.broadcast %cst_16 : f32 to vector<32x256xf32>
    %57 = vector.extract_strided_slice %55 {offsets = [0, 0], sizes = [32, 1], strides = [1, 1]} : vector<32x3xf32> to vector<32x1xf32>
    %58 = vector.broadcast %57 : vector<32x1xf32> to vector<32x256xf32>
    %59 = vector.broadcast %49 : vector<1x256xf32> to vector<32x256xf32>
    %60 = arith.mulf %58, %59 : vector<32x256xf32>
    %61 = arith.addf %56, %60 : vector<32x256xf32>
    %62 = vector.extract_strided_slice %55 {offsets = [0, 1], sizes = [32, 1], strides = [1, 1]} : vector<32x3xf32> to vector<32x1xf32>
    %63 = vector.broadcast %62 : vector<32x1xf32> to vector<32x256xf32>
    %64 = vector.broadcast %0 : vector<1x256xf32> to vector<32x256xf32>
    %65 = arith.mulf %63, %64 : vector<32x256xf32>
    %66 = arith.addf %61, %65 : vector<32x256xf32>
    %67 = vector.extract_strided_slice %55 {offsets = [0, 2], sizes = [32, 1], strides = [1, 1]} : vector<32x3xf32> to vector<32x1xf32>
    %68 = vector.broadcast %67 : vector<32x1xf32> to vector<32x256xf32>
    %69 = vector.broadcast %54 : vector<1x256xf32> to vector<32x256xf32>
    %70 = arith.mulf %68, %69 : vector<32x256xf32>
    %71 = arith.addf %66, %70 : vector<32x256xf32>
    %72 = vector.broadcast %44 : vector<32x1xf32> to vector<32x256xf32>
    %73 = arith.addf %71, %72 : vector<32x256xf32>
    %c0_17 = arith.constant 0 : index
    %c1 = arith.constant 1 : index
    %74 = vector.load %arg5[%c0_17, %c1] : memref<64x12xf32, #tpu.memory_space<vmem>>, vector<32x1xf32>
    %c0_18 = arith.constant 0 : index
    %c2 = arith.constant 2 : index
    %75 = vector.load %arg5[%c0_18, %c2] : memref<64x12xf32, #tpu.memory_space<vmem>>, vector<32x1xf32>
    %cst_19 = arith.constant dense<0.000000e+00> : vector<32xf32>
    %76 = vector.multi_reduction <add>, %73, %cst_19 [1] : vector<32x256xf32> to vector<32xf32>
    %77 = vector.shape_cast %76 : vector<32xf32> to vector<32x1xf32>
    %cst_20 = arith.constant 3.906250e-03 : f32
    %78 = vector.broadcast %cst_20 : f32 to vector<32x1xf32>
    %79 = arith.mulf %77, %78 : vector<32x1xf32>
    %80 = vector.broadcast %79 : vector<32x1xf32> to vector<32x256xf32>
    %81 = arith.subf %73, %80 : vector<32x256xf32>
    %82 = arith.mulf %81, %81 : vector<32x256xf32>
    %cst_21 = arith.constant dense<0.000000e+00> : vector<32xf32>
    %83 = vector.multi_reduction <add>, %82, %cst_21 [1] : vector<32x256xf32> to vector<32xf32>
    %84 = vector.shape_cast %83 : vector<32xf32> to vector<32x1xf32>
    %cst_22 = arith.constant 3.906250e-03 : f32
    %85 = vector.broadcast %cst_22 : f32 to vector<32x1xf32>
    %86 = arith.mulf %84, %85 : vector<32x1xf32>
    %cst_23 = arith.constant 9.99999974E-6 : f32
    %87 = vector.broadcast %cst_23 : f32 to vector<32x1xf32>
    %88 = arith.addf %86, %87 : vector<32x1xf32>
    %89 = math.rsqrt %88 : vector<32x1xf32>
    %90 = arith.mulf %74, %89 : vector<32x1xf32>
    %91 = vector.broadcast %90 : vector<32x1xf32> to vector<32x256xf32>
    %92 = arith.mulf %81, %91 : vector<32x256xf32>
    %93 = vector.broadcast %75 : vector<32x1xf32> to vector<32x256xf32>
    %94 = arith.addf %92, %93 : vector<32x256xf32>
    %cst_24 = arith.constant 3.000000e-01 : f32
    %95 = vector.broadcast %cst_24 : f32 to vector<32x256xf32>
    %96 = arith.mulf %95, %94 : vector<32x256xf32>
    %97 = arith.maximumf %94, %96 : vector<32x256xf32>
    %c0_25 = arith.constant 0 : index
    %c3 = arith.constant 3 : index
    %98 = vector.load %arg5[%c0_25, %c3] : memref<64x12xf32, #tpu.memory_space<vmem>>, vector<32x1xf32>
    %cst_26 = arith.constant 0.000000e+00 : f32
    %99 = vector.broadcast %cst_26 : f32 to vector<32x1xf32>
    %100 = vector.extract_strided_slice %97 {offsets = [0, 0], sizes = [32, 255], strides = [1, 1]} : vector<32x256xf32> to vector<32x255xf32>
    %101 = tpu.concatenate %99, %100 in 1 : vector<32x1xf32>, vector<32x255xf32> -> vector<32x256xf32>
    %102 = arith.mulf %101, %30 : vector<32x256xf32>
    %cst_27 = arith.constant 0.000000e+00 : f32
    %103 = vector.broadcast %cst_27 : f32 to vector<32x1xf32>
    %104 = vector.extract_strided_slice %97 {offsets = [0, 1], sizes = [32, 255], strides = [1, 1]} : vector<32x256xf32> to vector<32x255xf32>
    %105 = tpu.concatenate %104, %103 in 1 : vector<32x255xf32>, vector<32x1xf32> -> vector<32x256xf32>
    %106 = arith.mulf %105, %43 : vector<32x256xf32>
    %c0_28 = arith.constant 0 : index
    %c0_29 = arith.constant 0 : index
    %107 = vector.load %arg2[%c0_28, %c0_29] : memref<32x96xbf16, #tpu.memory_space<vmem>>, vector<32x96xbf16>
    %108 = tpu.concatenate %102, %97, %106 in 0 : vector<32x256xf32>, vector<32x256xf32>, vector<32x256xf32> -> vector<96x256xf32>
    %109 = arith.truncf %108 : vector<96x256xf32> to vector<96x256xbf16>
    %cst_30 = arith.constant dense<0.000000e+00> : vector<32x256xf32>
    %110 = tpu.matmul %107, %109, %cst_30 {dimension_numbers = #tpu.dot_dimension_numbers<[1], [0], [0], [1], [0, 0, 1, 1], [], []>} : vector<32x96xbf16>, vector<96x256xbf16>, vector<32x256xf32> -> vector<32x256xf32>
    %111 = vector.broadcast %98 : vector<32x1xf32> to vector<32x256xf32>
    %112 = arith.addf %110, %111 : vector<32x256xf32>
    %c0_31 = arith.constant 0 : index
    %c4 = arith.constant 4 : index
    %113 = vector.load %arg5[%c0_31, %c4] : memref<64x12xf32, #tpu.memory_space<vmem>>, vector<32x1xf32>
    %c0_32 = arith.constant 0 : index
    %c5 = arith.constant 5 : index
    %114 = vector.load %arg5[%c0_32, %c5] : memref<64x12xf32, #tpu.memory_space<vmem>>, vector<32x1xf32>
    %cst_33 = arith.constant dense<0.000000e+00> : vector<32xf32>
    %115 = vector.multi_reduction <add>, %112, %cst_33 [1] : vector<32x256xf32> to vector<32xf32>
    %116 = vector.shape_cast %115 : vector<32xf32> to vector<32x1xf32>
    %cst_34 = arith.constant 3.906250e-03 : f32
    %117 = vector.broadcast %cst_34 : f32 to vector<32x1xf32>
    %118 = arith.mulf %116, %117 : vector<32x1xf32>
    %119 = vector.broadcast %118 : vector<32x1xf32> to vector<32x256xf32>
    %120 = arith.subf %112, %119 : vector<32x256xf32>
    %121 = arith.mulf %120, %120 : vector<32x256xf32>
    %cst_35 = arith.constant dense<0.000000e+00> : vector<32xf32>
    %122 = vector.multi_reduction <add>, %121, %cst_35 [1] : vector<32x256xf32> to vector<32xf32>
    %123 = vector.shape_cast %122 : vector<32xf32> to vector<32x1xf32>
    %cst_36 = arith.constant 3.906250e-03 : f32
    %124 = vector.broadcast %cst_36 : f32 to vector<32x1xf32>
    %125 = arith.mulf %123, %124 : vector<32x1xf32>
    %cst_37 = arith.constant 9.99999974E-6 : f32
    %126 = vector.broadcast %cst_37 : f32 to vector<32x1xf32>
    %127 = arith.addf %125, %126 : vector<32x1xf32>
    %128 = math.rsqrt %127 : vector<32x1xf32>
    %129 = arith.mulf %113, %128 : vector<32x1xf32>
    %130 = vector.broadcast %129 : vector<32x1xf32> to vector<32x256xf32>
    %131 = arith.mulf %120, %130 : vector<32x256xf32>
    %132 = vector.broadcast %114 : vector<32x1xf32> to vector<32x256xf32>
    %133 = arith.addf %131, %132 : vector<32x256xf32>
    %cst_38 = arith.constant 3.000000e-01 : f32
    %134 = vector.broadcast %cst_38 : f32 to vector<32x256xf32>
    %135 = arith.mulf %134, %133 : vector<32x256xf32>
    %136 = arith.maximumf %133, %135 : vector<32x256xf32>
    %c0_39 = arith.constant 0 : index
    %c0_40 = arith.constant 0 : index
    %137 = vector.load %arg6[%c0_39, %c0_40] : memref<256x128xf32, #tpu.memory_space<vmem>>, vector<256x128xf32>
    %138 = vector.extract_strided_slice %136 {offsets = [0, 1], sizes = [32, 255], strides = [1, 1]} : vector<32x256xf32> to vector<32x255xf32>
    %139 = vector.extract_strided_slice %136 {offsets = [0, 0], sizes = [32, 1], strides = [1, 1]} : vector<32x256xf32> to vector<32x1xf32>
    %140 = tpu.concatenate %138, %139 in 1 : vector<32x255xf32>, vector<32x1xf32> -> vector<32x256xf32>
    %141 = arith.maximumf %136, %140 : vector<32x256xf32>
    %cst_41 = arith.constant dense<0.000000e+00> : vector<32x128xf32>
    %142 = tpu.matmul %141, %137, %cst_41 {dimension_numbers = #tpu.dot_dimension_numbers<[1], [0], [0], [1], [0, 0, 1, 1], [], []>} : vector<32x256xf32>, vector<256x128xf32>, vector<32x128xf32> -> vector<32x128xf32>
    %143 = tpu.iota {dimensions = array<i32: 1>} : vector<1x128xi32>
    %c64_i32 = arith.constant 64 : i32
    %c0_i32_42 = arith.constant 0 : i32
    %144 = arith.cmpi eq, %c64_i32, %c0_i32_42 : i32
    %c1_i32_43 = arith.constant 1 : i32
    %145 = arith.select %144, %c1_i32_43, %c64_i32 : i32
    %146 = vector.broadcast %145 : i32 to vector<1x128xi32>
    %147 = arith.remsi %143, %146 : vector<1x128xi32>
    %c0_i32_44 = arith.constant 0 : i32
    %148 = vector.broadcast %c0_i32_44 : i32 to vector<1x128xi32>
    %149 = arith.cmpi ne, %147, %148 : vector<1x128xi32>
    %c0_i32_45 = arith.constant 0 : i32
    %150 = vector.broadcast %c0_i32_45 : i32 to vector<1x128xi32>
    %151 = arith.cmpi slt, %147, %150 : vector<1x128xi32>
    %c0_i32_46 = arith.constant 0 : i32
    %152 = arith.cmpi slt, %145, %c0_i32_46 : i32
    %153 = vector.broadcast %152 : i1 to vector<1x128xi1>
    %154 = vector.broadcast %153 : vector<1x128xi1> to vector<1x128xi1>
    %155 = arith.xori %151, %154 : vector<1x128xi1>
    %156 = arith.andi %155, %149 : vector<1x128xi1>
    %157 = vector.broadcast %145 : i32 to vector<1x128xi32>
    %158 = arith.addi %147, %157 : vector<1x128xi32>
    %159 = arith.select %156, %158, %147 : vector<1x128xi1>, vector<1x128xi32>
    %c-1_i32_47 = arith.constant -1 : i32
    %160 = vector.broadcast %c-1_i32_47 : i32 to vector<1x128xi32>
    %161 = arith.addi %159, %160 : vector<1x128xi32>
    %c0_i32_48 = arith.constant 0 : i32
    %162 = vector.broadcast %c0_i32_48 : i32 to vector<1x128xi32>
    %163 = arith.cmpi sge, %161, %162 : vector<1x128xi32>
    %c-1_i32_49 = arith.constant -1 : i32
    %164 = vector.broadcast %c-1_i32_49 : i32 to vector<1x128xi32>
    %165 = arith.addi %159, %164 : vector<1x128xi32>
    %c64_i32_50 = arith.constant 64 : i32
    %166 = vector.broadcast %c64_i32_50 : i32 to vector<1x128xi32>
    %167 = arith.cmpi slt, %165, %166 : vector<1x128xi32>
    %168 = arith.andi %163, %167 : vector<1x128xi1>
    %169 = arith.extui %168 : vector<1x128xi1> to vector<1x128xi32>
    %170 = arith.sitofp %169 : vector<1x128xi32> to vector<1x128xf32>
    %171 = vector.shape_cast %170 : vector<1x128xf32> to vector<1x128xf32>
    %172 = vector.broadcast %171 : vector<1x128xf32> to vector<64x128xf32>
    %c1_i32_51 = arith.constant 1 : i32
    %173 = vector.broadcast %c1_i32_51 : i32 to vector<1x128xi32>
    %174 = arith.addi %159, %173 : vector<1x128xi32>
    %c0_i32_52 = arith.constant 0 : i32
    %175 = vector.broadcast %c0_i32_52 : i32 to vector<1x128xi32>
    %176 = arith.cmpi sge, %174, %175 : vector<1x128xi32>
    %c1_i32_53 = arith.constant 1 : i32
    %177 = vector.broadcast %c1_i32_53 : i32 to vector<1x128xi32>
    %178 = arith.addi %159, %177 : vector<1x128xi32>
    %c64_i32_54 = arith.constant 64 : i32
    %179 = vector.broadcast %c64_i32_54 : i32 to vector<1x128xi32>
    %180 = arith.cmpi slt, %178, %179 : vector<1x128xi32>
    %181 = arith.andi %176, %180 : vector<1x128xi1>
    %182 = arith.extui %181 : vector<1x128xi1> to vector<1x128xi32>
    %183 = arith.sitofp %182 : vector<1x128xi32> to vector<1x128xf32>
    %184 = vector.shape_cast %183 : vector<1x128xf32> to vector<1x128xf32>
    %185 = vector.broadcast %184 : vector<1x128xf32> to vector<64x128xf32>
    %c0_55 = arith.constant 0 : index
    %c6 = arith.constant 6 : index
    %186 = vector.load %arg5[%c0_55, %c6] : memref<64x12xf32, #tpu.memory_space<vmem>>, vector<64x1xf32>
    %cst_56 = arith.constant 0.000000e+00 : f32
    %187 = vector.broadcast %cst_56 : f32 to vector<32x1xf32>
    %188 = vector.extract_strided_slice %142 {offsets = [0, 0], sizes = [32, 127], strides = [1, 1]} : vector<32x128xf32> to vector<32x127xf32>
    %189 = tpu.concatenate %187, %188 in 1 : vector<32x1xf32>, vector<32x127xf32> -> vector<32x128xf32>
    %190 = vector.extract_strided_slice %172 {offsets = [0, 0], sizes = [32, 128], strides = [1, 1]} : vector<64x128xf32> to vector<32x128xf32>
    %191 = arith.mulf %189, %190 : vector<32x128xf32>
    %cst_57 = arith.constant 0.000000e+00 : f32
    %192 = vector.broadcast %cst_57 : f32 to vector<32x1xf32>
    %193 = vector.extract_strided_slice %142 {offsets = [0, 1], sizes = [32, 127], strides = [1, 1]} : vector<32x128xf32> to vector<32x127xf32>
    %194 = tpu.concatenate %193, %192 in 1 : vector<32x127xf32>, vector<32x1xf32> -> vector<32x128xf32>
    %195 = vector.extract_strided_slice %185 {offsets = [0, 0], sizes = [32, 128], strides = [1, 1]} : vector<64x128xf32> to vector<32x128xf32>
    %196 = arith.mulf %194, %195 : vector<32x128xf32>
    %c0_58 = arith.constant 0 : index
    %c0_59 = arith.constant 0 : index
    %197 = vector.load %arg3[%c0_58, %c0_59] : memref<64x96xbf16, #tpu.memory_space<vmem>>, vector<64x96xbf16>
    %198 = tpu.concatenate %191, %142, %196 in 0 : vector<32x128xf32>, vector<32x128xf32>, vector<32x128xf32> -> vector<96x128xf32>
    %199 = arith.truncf %198 : vector<96x128xf32> to vector<96x128xbf16>
    %cst_60 = arith.constant dense<0.000000e+00> : vector<64x128xf32>
    %200 = tpu.matmul %197, %199, %cst_60 {dimension_numbers = #tpu.dot_dimension_numbers<[1], [0], [0], [1], [0, 0, 1, 1], [], []>} : vector<64x96xbf16>, vector<96x128xbf16>, vector<64x128xf32> -> vector<64x128xf32>
    %201 = vector.broadcast %186 : vector<64x1xf32> to vector<64x128xf32>
    %202 = arith.addf %200, %201 : vector<64x128xf32>
    %c0_61 = arith.constant 0 : index
    %c7 = arith.constant 7 : index
    %203 = vector.load %arg5[%c0_61, %c7] : memref<64x12xf32, #tpu.memory_space<vmem>>, vector<64x1xf32>
    %c0_62 = arith.constant 0 : index
    %c8 = arith.constant 8 : index
    %204 = vector.load %arg5[%c0_62, %c8] : memref<64x12xf32, #tpu.memory_space<vmem>>, vector<64x1xf32>
    %cst_63 = arith.constant dense<0.000000e+00> : vector<64xf32>
    %205 = vector.multi_reduction <add>, %202, %cst_63 [1] : vector<64x128xf32> to vector<64xf32>
    %206 = vector.shape_cast %205 : vector<64xf32> to vector<64x1xf32>
    %cst_64 = arith.constant 7.812500e-03 : f32
    %207 = vector.broadcast %cst_64 : f32 to vector<64x1xf32>
    %208 = arith.mulf %206, %207 : vector<64x1xf32>
    %209 = vector.broadcast %208 : vector<64x1xf32> to vector<64x128xf32>
    %210 = arith.subf %202, %209 : vector<64x128xf32>
    %211 = arith.mulf %210, %210 : vector<64x128xf32>
    %cst_65 = arith.constant dense<0.000000e+00> : vector<64xf32>
    %212 = vector.multi_reduction <add>, %211, %cst_65 [1] : vector<64x128xf32> to vector<64xf32>
    %213 = vector.shape_cast %212 : vector<64xf32> to vector<64x1xf32>
    %cst_66 = arith.constant 7.812500e-03 : f32
    %214 = vector.broadcast %cst_66 : f32 to vector<64x1xf32>
    %215 = arith.mulf %213, %214 : vector<64x1xf32>
    %cst_67 = arith.constant 9.99999974E-6 : f32
    %216 = vector.broadcast %cst_67 : f32 to vector<64x1xf32>
    %217 = arith.addf %215, %216 : vector<64x1xf32>
    %218 = math.rsqrt %217 : vector<64x1xf32>
    %219 = arith.mulf %203, %218 : vector<64x1xf32>
    %220 = vector.broadcast %219 : vector<64x1xf32> to vector<64x128xf32>
    %221 = arith.mulf %210, %220 : vector<64x128xf32>
    %222 = vector.broadcast %204 : vector<64x1xf32> to vector<64x128xf32>
    %223 = arith.addf %221, %222 : vector<64x128xf32>
    %cst_68 = arith.constant 3.000000e-01 : f32
    %224 = vector.broadcast %cst_68 : f32 to vector<64x128xf32>
    %225 = arith.mulf %224, %223 : vector<64x128xf32>
    %226 = arith.maximumf %223, %225 : vector<64x128xf32>
    %c0_69 = arith.constant 0 : index
    %c9 = arith.constant 9 : index
    %227 = vector.load %arg5[%c0_69, %c9] : memref<64x12xf32, #tpu.memory_space<vmem>>, vector<64x1xf32>
    %cst_70 = arith.constant 0.000000e+00 : f32
    %228 = vector.broadcast %cst_70 : f32 to vector<64x1xf32>
    %229 = vector.extract_strided_slice %226 {offsets = [0, 0], sizes = [64, 127], strides = [1, 1]} : vector<64x128xf32> to vector<64x127xf32>
    %230 = tpu.concatenate %228, %229 in 1 : vector<64x1xf32>, vector<64x127xf32> -> vector<64x128xf32>
    %231 = arith.mulf %230, %172 : vector<64x128xf32>
    %cst_71 = arith.constant 0.000000e+00 : f32
    %232 = vector.broadcast %cst_71 : f32 to vector<64x1xf32>
    %233 = vector.extract_strided_slice %226 {offsets = [0, 1], sizes = [64, 127], strides = [1, 1]} : vector<64x128xf32> to vector<64x127xf32>
    %234 = tpu.concatenate %233, %232 in 1 : vector<64x127xf32>, vector<64x1xf32> -> vector<64x128xf32>
    %235 = arith.mulf %234, %185 : vector<64x128xf32>
    %c0_72 = arith.constant 0 : index
    %c0_73 = arith.constant 0 : index
    %236 = vector.load %arg4[%c0_72, %c0_73] : memref<64x192xbf16, #tpu.memory_space<vmem>>, vector<64x192xbf16>
    %237 = tpu.concatenate %231, %226, %235 in 0 : vector<64x128xf32>, vector<64x128xf32>, vector<64x128xf32> -> vector<192x128xf32>
    %238 = arith.truncf %237 : vector<192x128xf32> to vector<192x128xbf16>
    %cst_74 = arith.constant dense<0.000000e+00> : vector<64x128xf32>
    %239 = tpu.matmul %236, %238, %cst_74 {dimension_numbers = #tpu.dot_dimension_numbers<[1], [0], [0], [1], [0, 0, 1, 1], [], []>} : vector<64x192xbf16>, vector<192x128xbf16>, vector<64x128xf32> -> vector<64x128xf32>
    %240 = vector.broadcast %227 : vector<64x1xf32> to vector<64x128xf32>
    %241 = arith.addf %239, %240 : vector<64x128xf32>
    %c0_75 = arith.constant 0 : index
    %c10 = arith.constant 10 : index
    %242 = vector.load %arg5[%c0_75, %c10] : memref<64x12xf32, #tpu.memory_space<vmem>>, vector<64x1xf32>
    %c0_76 = arith.constant 0 : index
    %c11 = arith.constant 11 : index
    %243 = vector.load %arg5[%c0_76, %c11] : memref<64x12xf32, #tpu.memory_space<vmem>>, vector<64x1xf32>
    %cst_77 = arith.constant dense<0.000000e+00> : vector<64xf32>
    %244 = vector.multi_reduction <add>, %241, %cst_77 [1] : vector<64x128xf32> to vector<64xf32>
    %245 = vector.shape_cast %244 : vector<64xf32> to vector<64x1xf32>
    %cst_78 = arith.constant 7.812500e-03 : f32
    %246 = vector.broadcast %cst_78 : f32 to vector<64x1xf32>
    %247 = arith.mulf %245, %246 : vector<64x1xf32>
    %248 = vector.broadcast %247 : vector<64x1xf32> to vector<64x128xf32>
    %249 = arith.subf %241, %248 : vector<64x128xf32>
    %250 = arith.mulf %249, %249 : vector<64x128xf32>
    %cst_79 = arith.constant dense<0.000000e+00> : vector<64xf32>
    %251 = vector.multi_reduction <add>, %250, %cst_79 [1] : vector<64x128xf32> to vector<64xf32>
    %252 = vector.shape_cast %251 : vector<64xf32> to vector<64x1xf32>
    %cst_80 = arith.constant 7.812500e-03 : f32
    %253 = vector.broadcast %cst_80 : f32 to vector<64x1xf32>
    %254 = arith.mulf %252, %253 : vector<64x1xf32>
    %cst_81 = arith.constant 9.99999974E-6 : f32
    %255 = vector.broadcast %cst_81 : f32 to vector<64x1xf32>
    %256 = arith.addf %254, %255 : vector<64x1xf32>
    %257 = math.rsqrt %256 : vector<64x1xf32>
    %258 = arith.mulf %242, %257 : vector<64x1xf32>
    %259 = vector.broadcast %258 : vector<64x1xf32> to vector<64x128xf32>
    %260 = arith.mulf %249, %259 : vector<64x128xf32>
    %261 = vector.broadcast %243 : vector<64x1xf32> to vector<64x128xf32>
    %262 = arith.addf %260, %261 : vector<64x128xf32>
    %cst_82 = arith.constant 3.000000e-01 : f32
    %263 = vector.broadcast %cst_82 : f32 to vector<64x128xf32>
    %264 = arith.mulf %263, %262 : vector<64x128xf32>
    %265 = arith.maximumf %262, %264 : vector<64x128xf32>
    %c0_83 = arith.constant 0 : index
    %c0_84 = arith.constant 0 : index
    %266 = vector.load %arg7[%c0_83, %c0_84] : memref<64x128xf32, #tpu.memory_space<vmem>>, vector<64x128xf32>
    tpu.vector_store %arg7[%c0_83, %c0_84], %265 {strides = array<i32>} : memref<64x128xf32, #tpu.memory_space<vmem>>, vector<64x128xf32>,
    return
  }
}

</mosaic_0001>

<bundles_post_ra>
// kernel: tpu_custom_call.1
= control target key start
LH: loop header
LB: loop body
LE: loop exit
PB: predicated region body
PF: predicated region fallthrough
CT: control target
= control target key end

     0   :  { %12 = vsyncpa [#allocation3], 0  ;;  %s2879_s0 = inlined_call_operand.vmem [shape: f32[1,256], index: 0, kind: input, shape index: {}]   ;;  %s2880_s1 = inlined_call_operand.vmem [shape: f32[32,3], index: 1, kind: input, shape index: {}]   ;;  %s2881_s2 = inlined_call_operand.vmem [shape: bf16[32,96], index: 2, kind: input, shape index: {}]   ;;  %s2882_s3 = inlined_call_operand.vmem [shape: bf16[64,96], index: 3, kind: input, shape index: {}]   ;;  %s2883_s4 = inlined_call_operand.vmem [shape: bf16[64,192], index: 4, kind: input, shape index: {}]   ;;  %s2884_s5 = inlined_call_operand.vmem [shape: f32[64,12], index: 5, kind: input, shape index: {}]   ;;  %s2885_s6 = inlined_call_operand.hbm [shape: f32[256,128], index: 6, kind: input, shape index: {}]   ;;  %s2886_s7 = inlined_call_operand.hbm [shape: f32[64,128], index: 7, kind: output, shape index: {}]  }
   0x1   :  { %13 = vsyncpa [#allocation4], 0  ;;  %s2113_s24 = smov [#allocation2]   ;;  %s2065_s28 = scalar_lea.hbm %s2885_s6, 4096 }
   0x2   :  { %s31_s25 = sshll.u32 %s2113_s24, 4  ;;  %p2066_p0 = scmp.ne.s32.totalorder %s2885_s6, %s2065_s28  ;;  %s32_s25 = int_to_ptr.vmem [resolvable:$true] %s31_s25 }
   0x3   :  { %p2069_p1 = scmp.lt.u32.totalorder %s2065_s28, %s2885_s6 }
   0x5   :  { %p2071_p2 = pnand %p2069_p1, %p2066_p0 }
   0x7   :  { %2074 = shalt.err (!%p2071_p2)
}
   0x8   :  { %s2075_s10 = scalar_lea.vmem %s32_s25, 4096  ;;  %p2080_p4 = scmp.lt.s32.totalorder %s32_s25, %s32_s25 }
   0x9   :  { %p2076_p3 = scmp.ne.s32.totalorder %s32_s25, %s2075_s10  ;;  %p2081_p5 = scmp.lt.s32.totalorder %s2075_s10, %s2075_s10 }
   0xb   :  { %p2082_p6 = por %p2081_p5, %p2080_p4 }
   0xd   :  { %p2083_p7 = pnand %p2082_p6, %p2076_p3 }
   0xf   :  { %2086 = shalt.err (!%p2083_p7)
}
  0x10   :  { %s2114_s11 = smov 128   ;;  %s2115_s12 = smov 8  }
  0x11   :  { %37 = dma.hbm_to_vmem [thread:$0]  %s2885_s6, 4096, %s32_s25, [#allocation3], %s2114_s11, %s2114_s11, %s2115_s12  }
  0x12   :  { %2109 = dma.done.wait [#allocation3], 4096  }
  0x13   :  { %2110 = vsyncadd [#allocation3], 4294963200  ;;  %v43_v0 = vlaneseq  ;;  %v2116_v1 = vmov 1   ;;  %v2117_v2 = vmov 2   ;;  %v2118_v4 = vmov 0   ;;  %v129_v6 = vld [vmem:[%s2880_s1] sm:$0xff] }
  0x14   :  { %1939 = vset.pattern.permute.xlu1 %v2116_v1  ;;  %1940 = vset.pattern.permute.xlu0 %v2117_v2  ;;  %v42_v7 = vld [vmem:[%s2879_s0] sm:$0x3]  ;;  %v130_v11 = vld [vmem:[%s2880_s1 + $0x8] sm:$0xff]  ;;  %s2119_s20 = smov 1   ;;  %v2120_v16 = vmov 0.0   ;;  %s2121_s0 = smov 127  }
  0x15   :  { %v100_v3 = vshrl.u32 %v43_v0, 7  ;;  %576 = vmatprep.mubr.bf16.mxu0 %v2118_v4  ;;  %1502 = vmatprep.subr.bf16.mxu1 %v2118_v4  ;;  %v44_v8 = vand.u32 127, %v43_v0  ;;  %v131_v19 = vld [vmem:[%s2880_s1 + $0x10] sm:$0xff]  ;;  %v132_v20 = vld [vmem:[%s2880_s1 + $0x18] sm:$0xff]  ;;  %v2232_v21 = vld [vmem:[%s2884_s5 + $0x8] sm:$0xff]  ;;  %vm111_vm3 = vcmask 7168  }
  0x16   :  { %178 = vperm.xlu1 %1939, %v129_v6   ;;  %v2240_v22 = vld [vmem:[%s2884_s5] sm:$0xff]  ;;  %v2247_v23 = vld [vmem:[%s2884_s5 + $0x10] sm:$0xff]  ;;  %v2253_v24 = vld [vmem:[%s2884_s5 + $0x18] sm:$0xff]  ;;  %vm122_vm6 = vcmask 1039360   ;;  %vm537_vm8 = vcmask 785408   ;;  %vm1489_vm9 = vcmask 523264  }
  0x17   :  { %v2191_v5 = vsub.s32 0, %v100_v3  ;;  %v105_v10 = vsub.s32 1, %v100_v3  ;;  %v898_v12 = vand.u32 63, %v44_v8  ;;  %v45_v27 = vadd.s32 128, %v44_v8 }
  0x18   :  { %v70_v31 = vadd.s32 4294967295, %v44_v8  ;;  %v82_v36 = vadd.s32 1, %v44_v8 }
  0x19   :  { %v2200_v9 = vrot.slane %v42_v7, %v2191_v5  ;;  %v906_v13 = vadd.s32 4294967295, %v898_v12  ;;  %v912_v14 = vadd.s32 1, %v898_v12  ;;  %v2207_v15 = vrot.slane %v42_v7, %v105_v10 }
  0x1a   :  { %182 = vperm.xlu1 %1939, %v130_v11   ;;  %v57_v29 = vand.u32 127, %v45_v27  ;;  %vm72_vm2 = vcmp.ge.s32.totalorder %v70_v31, 0  ;;  %vm86_vm7 = vcmp.lt.s32.totalorder %v82_v36, 128 }
  0x1b   :  { %107 = vrot.lane.b32.xlu0 %v2200_v9, %s2119_s20  ;;  %vm907_vm0 = vcmp.ge.s32.totalorder %v906_v13, 0  ;;  %vm914_vm1 = vcmp.lt.s32.totalorder %v912_v14, 64  ;;  %v2259_v39 = vsel %vm72_vm2, 1.0, %v2120_v16  ;;  %v2268_v46 = vsel %vm86_vm7, 1.0, %v2120_v16 }
  0x1c   :  { %v2209_v17 = vsel %vm907_vm0, 1.0, %v2120_v16  ;;  %v2211_v18 = vsel %vm914_vm1, 1.0, %v2120_v16  ;;  %v71_v32 = vadd.s32 4294967295, %v57_v29  ;;  %v83_v34 = vadd.s32 1, %v57_v29 }
  0x1e   :  { %109 = vrot.lane.b32.xlu1 %v2207_v15, %s2119_s20  ;;  %vm73_vm4 = vcmp.ge.s32.totalorder %v71_v32, 0  ;;  %vm87_vm5 = vcmp.lt.s32.totalorder %v83_v34, 128 }
  0x1f   :  { %212 = vperm.xlu0 %1940, %v129_v6   ;;  %1941 = vset.pattern.permute.xlu1 %v2117_v2  ;;  %v2262_v41 = vsel %vm73_vm4, 1.0, %v2120_v16  ;;  %v2265_v44 = vsel %vm87_vm5, 1.0, %v2120_v16 }
  0x22   :  { %216 = vperm.xlu1 %1941, %v130_v11  }
  0x23   :  { %120 = vrot.lane.b32.xlu0 %v2207_v15, %s2121_s0 }
  0x26   :  { %118 = vrot.lane.b32.xlu1 %v2200_v9, %s2121_s0 }
  0x27   :  { %220 = vperm.xlu0 %1940, %v131_v19   ;;  %1942 = vset.pattern.permute.xlu1 %v2118_v4 }
  0x2a   :  { %145 = vperm.xlu1 %1942, %v131_v19  }
  0x2b   :  { %1944 = vset.pattern.permute.xlu0 %v2118_v4 }
  0x2c   :  { %135 = vperm.xlu0 %1944, %v129_v6  }
  0x2e   :  { %1943 = vset.pattern.permute.xlu1 %v2116_v1 }
  0x2f   :  { %186 = vperm.xlu1 %1943, %v131_v19  }
  0x30   :  { %140 = vperm.xlu0 %1944, %v130_v11  }
  0x33   :  { %190 = vperm.xlu1 %1943, %v132_v20  }
  0x34   :  { %150 = vperm.xlu0 %1944, %v132_v20  }
  0x37   :  { %1945 = vset.pattern.permute.xlu1 %v2117_v2 }
  0x38   :  { %258 = vperm.xlu0 %1944, %v2232_v21   ;;  %224 = vperm.xlu1 %1945, %v132_v20  }
  0x3c   :  { %1948 = vset.pattern.permute.xlu0 %v2116_v1  ;;  %1946 = vset.pattern.permute.xlu1 %v2118_v4 }
  0x3d   :  { %253 = vperm.xlu1 %1946, %v2240_v22  }
  0x41   :  { %263 = vperm.xlu1 %1946, %v2247_v23  }
  0x45   :  { %268 = vperm.xlu1 %1946, %v2253_v24  }
  0x49   :  { %1947 = vset.pattern.permute.xlu1 %v2116_v1 }
  0x8d   :  { %v108_v26 = vpop.permute.xlu0 %107 }
  0x8e   :  { %v115_v40 = vsel %vm111_vm3, 0.0, %v108_v26 }
  0x8f   :  { %v116_v48 = vmul.f32 %v2259_v39, %v115_v40 }
  0x91   :  { %v156_v54 = vrot.slane %v116_v48, %v2191_v5 }
  0x95   :  { %v179_v25 = vpop.permute.xlu1 %178 }
  0x96   :  { %v195_v16 = vmul.f32 %v179_v25, %v2200_v9  ;;  %v196_v20 = vmul.f32 %v179_v25, %v2207_v15 }
  0x99   :  { %v183_v28 = vpop.permute.xlu1 %182 }
  0x9a   :  { %v197_v56 = vmul.f32 %v183_v28, %v2200_v9  ;;  %v198_v57 = vmul.f32 %v183_v28, %v2207_v15 }
  0x9d   :  { %v110_v33 = vpop.permute.xlu1 %109 }
  0x9e   :  { %v2257_v30 = vpop.permute.xlu0 %212  ;;  %v112_v42 = vsel %vm111_vm3, %v108_v26, %v110_v33 }
  0x9f   :  { %v117_v49 = vmul.f32 %v2262_v41, %v112_v42 }
  0xa1   :  { %v217_v37 = vpop.permute.xlu1 %216  ;;  %v160_v55 = vrot.slane %v117_v49, %v2191_v5 }
  0xa2   :  { %v121_v35 = vpop.permute.xlu0 %120 }
  0xa3   :  { %v126_v45 = vsel %vm122_vm6, %v121_v35, 0.0 }
  0xa4   :  { %v128_v51 = vmul.f32 %v2265_v44, %v126_v45 }
  0xa5   :  { %v119_v43 = vpop.permute.xlu1 %118 }
  0xa6   :  { %v221_v38 = vpop.permute.xlu0 %220  ;;  %v123_v47 = vsel %vm122_vm6, %v119_v43, %v121_v35  ;;  %v234_v59 = vrot.slane %v128_v51, %v2191_v5 }
  0xa7   :  { %v127_v52 = vmul.f32 %v2268_v46, %v123_v47 }
  0xa8   :  { %v238_v7 = vmul.f32 %v234_v59, %v217_v37  ;;  %v240_v45 = vmul.f32 %v234_v59, %v221_v38 }
  0xa9   :  { %v146_v53 = vpop.permute.xlu1 %145  ;;  %v230_v60 = vrot.slane %v127_v52, %v2191_v5 }
  0xaa   :  { %v165_v35 = vmul.f32 %v156_v54, %v146_v53  ;;  %v166_v36 = vmul.f32 %v160_v55, %v146_v53 }
  0xab   :  { %v136_v50 = vpop.permute.xlu0 %135  ;;  %v237_v8 = vmul.f32 %v230_v60, %v217_v37  ;;  %v235_v34 = vmul.f32 %v230_v60, %v2257_v30  ;;  %v236_v37 = vmul.f32 %v234_v59, %v2257_v30  ;;  %v239_v48 = vmul.f32 %v230_v60, %v221_v38 }
  0xac   :  { %v161_v10 = vmul.f32 %v156_v54, %v136_v50  ;;  %v162_v12 = vmul.f32 %v160_v55, %v136_v50 }
  0xae   :  { %v187_v63 = vpop.permute.xlu1 %186  ;;  %v203_v27 = vadd.f32 %v195_v16, %v161_v10  ;;  %v204_v29 = vadd.f32 %v196_v20, %v162_v12 }
  0xaf   :  { %v141_v58 = vpop.permute.xlu0 %140  ;;  %v199_v28 = vmul.f32 %v187_v63, %v2200_v9  ;;  %v200_v31 = vmul.f32 %v187_v63, %v2207_v15 }
  0xb0   :  { %v163_v61 = vmul.f32 %v156_v54, %v141_v58  ;;  %v164_v62 = vmul.f32 %v160_v55, %v141_v58  ;;  %v243_v25 = vadd.f32 %v235_v34, %v203_v27  ;;  %v244_v43 = vadd.f32 %v236_v37, %v204_v29 }
  0xb1   :  { %v207_v40 = vadd.f32 %v199_v28, %v165_v35  ;;  %v208_v42 = vadd.f32 %v200_v31, %v166_v36 }
  0xb2   :  { %v205_v0 = vadd.f32 %v197_v56, %v163_v61  ;;  %v206_v3 = vadd.f32 %v198_v57, %v164_v62  ;;  %v191_v11 = vpop.permute.xlu1 %190 }
  0xb3   :  { %v151_v6 = vpop.permute.xlu0 %150  ;;  %v201_v49 = vmul.f32 %v191_v11, %v2200_v9  ;;  %v202_v50 = vmul.f32 %v191_v11, %v2207_v15  ;;  %v247_v58 = vadd.f32 %v239_v48, %v207_v40  ;;  %v248_v30 = vadd.f32 %v240_v45, %v208_v42 }
  0xb4   :  { %v245_v13 = vadd.f32 %v237_v8, %v205_v0  ;;  %v246_v14 = vadd.f32 %v238_v7, %v206_v3  ;;  %v167_v56 = vmul.f32 %v156_v54, %v151_v6  ;;  %v168_v57 = vmul.f32 %v160_v55, %v151_v6 }
  0xb6   :  { %v209_v0 = vadd.f32 %v201_v49, %v167_v56  ;;  %v210_v3 = vadd.f32 %v202_v50, %v168_v57 }
  0xb7   :  { %v259_v19 = vpop.permute.xlu0 %258  ;;  %v225_v32 = vpop.permute.xlu1 %224 }
  0xb8   :  { %v273_v26 = vadd.f32 %v259_v19, %v245_v13  ;;  %v274_v5 = vadd.f32 %v259_v19, %v246_v14  ;;  %v241_v53 = vmul.f32 %v230_v60, %v225_v32  ;;  %v242_v61 = vmul.f32 %v234_v59, %v225_v32 }
  0xba   :  { %v282_v33 = vadd.f32 %v274_v5, %v273_v26  ;;  %v249_v10 = vadd.f32 %v241_v53, %v209_v0  ;;  %v250_v9 = vadd.f32 %v242_v61, %v210_v3 }
  0xbc   :  { %283 = vadd.xlane.f32.xlu1 %v282_v33  ;;  %v254_v47 = vpop.permute.xlu1 %253 }
  0xbd   :  { %v271_v51 = vadd.f32 %v254_v47, %v243_v25  ;;  %v272_v52 = vadd.f32 %v254_v47, %v244_v43 }
  0xbf   :  { %v279_v62 = vadd.f32 %v272_v52, %v271_v51 }
  0xc0   :  { %v264_v63 = vpop.permute.xlu1 %263 }
  0xc1   :  { %280 = vadd.xlane.f32.xlu0 %v279_v62  ;;  %v275_v7 = vadd.f32 %v264_v63, %v247_v58  ;;  %v276_v8 = vadd.f32 %v264_v63, %v248_v30 }
  0xc3   :  { %v285_v38 = vadd.f32 %v276_v8, %v275_v7 }
  0xc4   :  { %v269_v12 = vpop.permute.xlu1 %268 }
  0xc5   :  { %286 = vadd.xlane.f32.xlu0 %v285_v38  ;;  %v277_v15 = vadd.f32 %v269_v12, %v249_v10  ;;  %v278_v11 = vadd.f32 %v269_v12, %v250_v9 }
  0xc7   :  { %v288_v54 = vadd.f32 %v278_v11, %v277_v15 }
  0xc9   :  { %289 = vadd.xlane.f32.xlu0 %v288_v54 }
 0x149   :  { %v284_v55 = vpop.xlane.xlu1 %283 }
 0x14a   :  { %v292_v60 = vmul.f32 0.00390625, %v284_v55 }
 0x14c   :  { %v2289_v59 = vsub.f32 %v273_v26, %v292_v60  ;;  %v2291_v6 = vsub.f32 %v274_v5, %v292_v60 }
 0x14e   :  { %v305_v13 = vmul.f32 %v2289_v59, %v2289_v59  ;;  %v306_v14 = vmul.f32 %v2291_v6, %v2291_v6  ;;  %v281_v19 = vpop.xlane.xlu0 %280 }
 0x14f   :  { %v291_v20 = vmul.f32 0.00390625, %v281_v19 }
 0x150   :  { %v314_v16 = vadd.f32 %v306_v14, %v305_v13 }
 0x151   :  { %v295_v27 = vsub.f32 %v271_v51, %v291_v20  ;;  %v296_v28 = vsub.f32 %v272_v52, %v291_v20 }
 0x152   :  { %315 = vadd.xlane.f32.xlu0 %v314_v16  ;;  %v287_v29 = vpop.xlane.xlu0 %286 }
 0x153   :  { %v293_v31 = vmul.f32 0.00390625, %v287_v29  ;;  %v303_v32 = vmul.f32 %v295_v27, %v295_v27  ;;  %v304_v33 = vmul.f32 %v296_v28, %v296_v28 }
 0x155   :  { %v2297_v26 = vsub.f32 %v275_v7, %v293_v31  ;;  %v2299_v5 = vsub.f32 %v276_v8, %v293_v31  ;;  %v311_v34 = vadd.f32 %v304_v33, %v303_v32 }
 0x156   :  { %v290_v35 = vpop.xlane.xlu0 %289 }
 0x157   :  { %v294_v36 = vmul.f32 0.00390625, %v290_v35  ;;  %312 = vadd.xlane.f32.xlu1 %v311_v34  ;;  %v307_v37 = vmul.f32 %v2297_v26, %v2297_v26  ;;  %v308_v40 = vmul.f32 %v2299_v5, %v2299_v5 }
 0x159   :  { %v2305_v42 = vsub.f32 %v277_v15, %v294_v36  ;;  %v2307_v25 = vsub.f32 %v278_v11, %v294_v36  ;;  %v317_v43 = vadd.f32 %v308_v40, %v307_v37 }
 0x15b   :  { %318 = vadd.xlane.f32.xlu1 %v317_v43  ;;  %v309_v45 = vmul.f32 %v2305_v42, %v2305_v42  ;;  %v310_v47 = vmul.f32 %v2307_v25, %v2307_v25 }
 0x15d   :  { %v320_v48 = vadd.f32 %v310_v47, %v309_v45 }
 0x15f   :  { %321 = vadd.xlane.f32.xlu0 %v320_v48 }
 0x1df   :  { %v316_v49 = vpop.xlane.xlu0 %315 }
 0x1e0   :  { %v324_v50 = vmul.f32 0.00390625, %v316_v49 }
 0x1e2   :  { %v328_v51 = vadd.f32 1e-05, %v324_v50 }
 0x1e4   :  { %2013 = vrsqrt.f32 %v328_v51  ;;  %v313_v52 = vpop.xlane.xlu1 %312 }
 0x1e5   :  { %v323_v56 = vmul.f32 0.00390625, %v313_v52 }
 0x1e7   :  { %v327_v57 = vadd.f32 1e-05, %v323_v56 }
 0x1e8   :  { %v319_v61 = vpop.xlane.xlu1 %318 }
 0x1e9   :  { %2015 = vrsqrt.f32 %v327_v57  ;;  %v325_v62 = vmul.f32 0.00390625, %v319_v61 }
 0x1eb   :  { %v329_v3 = vadd.f32 1e-05, %v325_v62 }
 0x1ec   :  { %v322_v30 = vpop.xlane.xlu0 %321 }
 0x1ed   :  { %v326_v7 = vmul.f32 0.00390625, %v322_v30  ;;  %2017 = vrsqrt.f32 %v329_v3 }
 0x1ee   :  { %v2014_v58 = vpop.eup %2013 }
 0x1ef   :  { %v336_v53 = vmul.f32 %v2014_v58, %v2232_v21  ;;  %v330_v8 = vadd.f32 1e-05, %v326_v7 }
 0x1f1   :  { %346 = vperm.xlu0 %1948, %v336_v53   ;;  %2019 = vrsqrt.f32 %v330_v8 }
 0x1f3   :  { %v2016_v63 = vpop.eup %2015 }
 0x1f4   :  { %v335_v0 = vmul.f32 %v2016_v63, %v2240_v22  ;;  %v2122_v63 = vmov 3  }
 0x1f5   :  { %1952 = vset.pattern.permute.xlu0 %v2122_v63 }
 0x1f6   :  { %341 = vperm.xlu1 %1947, %v335_v0  }
 0x1f7   :  { %v2018_v38 = vpop.eup %2017 }
 0x1f8   :  { %v337_v10 = vmul.f32 %v2018_v38, %v2247_v23 }
 0x1fa   :  { %1949 = vset.pattern.permute.xlu1 %v2117_v2 }
 0x1fb   :  { %368 = vperm.xlu1 %1949, %v2240_v22   ;;  %v2020_v9 = vpop.eup %2019 }
 0x1fc   :  { %v338_v12 = vmul.f32 %v2020_v9, %v2253_v24 }
 0x1ff   :  { %372 = vperm.xlu1 %1949, %v2232_v21  }
 0x203   :  { %376 = vperm.xlu1 %1949, %v2247_v23  }
 0x207   :  { %1950 = vset.pattern.permute.xlu1 %v2116_v1 }
 0x208   :  { %351 = vperm.xlu1 %1950, %v337_v10  }
 0x20c   :  { %356 = vperm.xlu1 %1950, %v338_v12  }
 0x210   :  { %1951 = vset.pattern.permute.xlu1 %v2117_v2 }
 0x211   :  { %380 = vperm.xlu1 %1951, %v2253_v24  }
 0x215   :  { %1953 = vset.pattern.permute.xlu1 %v2122_v63 }
 0x270   :  { %v347_v55 = vpop.permute.xlu0 %346 }
 0x271   :  { %v361_v16 = vmul.f32 %v347_v55, %v2289_v59  ;;  %v362_v19 = vmul.f32 %v347_v55, %v2291_v6 }
 0x275   :  { %v342_v15 = vpop.permute.xlu1 %341 }
 0x276   :  { %v359_v11 = vmul.f32 %v342_v15, %v295_v27  ;;  %v360_v54 = vmul.f32 %v342_v15, %v296_v28 }
 0x27a   :  { %v369_v60 = vpop.permute.xlu1 %368 }
 0x27b   :  { %v383_v13 = vadd.f32 %v369_v60, %v359_v11  ;;  %v384_v14 = vadd.f32 %v369_v60, %v360_v54 }
 0x27d   :  { %v391_v1 = vmul.f32 0.3, %v383_v13  ;;  %v392_v29 = vmul.f32 0.3, %v384_v14 }
 0x27e   :  { %v373_v20 = vpop.permute.xlu1 %372 }
 0x27f   :  { %v385_v31 = vadd.f32 %v373_v20, %v361_v16  ;;  %v386_v32 = vadd.f32 %v373_v20, %v362_v19  ;;  %v2326_v33 = vmax.f32 %v383_v13, %v391_v1  ;;  %v2330_v28 = vmax.f32 %v384_v14, %v392_v29 }
 0x281   :  { %v393_v2 = vmul.f32 0.3, %v385_v31  ;;  %v394_v34 = vmul.f32 0.3, %v386_v32  ;;  %415 = vrot.lane.b32.xlu1 %v2326_v33, %s2119_s20 }
 0x282   :  { %v377_v27 = vpop.permute.xlu1 %376 }
 0x283   :  { %v2332_v35 = vmax.f32 %v385_v31, %v393_v2  ;;  %v2334_v59 = vmax.f32 %v386_v32, %v394_v34 }
 0x285   :  { %417 = vrot.lane.b32.xlu1 %v2330_v28, %s2119_s20  ;;  %419 = vrot.lane.b32.xlu0 %v2332_v35, %s2119_s20  ;;  %v504_v6 = vpack.c.bf16 %v2334_v59, %v2330_v28  ;;  %v503_v36 = vpack.c.bf16 %v2332_v35, %v2326_v33 }
 0x287   :  { %v352_v37 = vpop.permute.xlu1 %351 }
 0x288   :  { %v363_v40 = vmul.f32 %v352_v37, %v2297_v26  ;;  %v364_v43 = vmul.f32 %v352_v37, %v2299_v5 }
 0x289   :  { %421 = vrot.lane.b32.xlu1 %v2334_v59, %s2119_s20 }
 0x28a   :  { %v387_v45 = vadd.f32 %v377_v27, %v363_v40  ;;  %v388_v47 = vadd.f32 %v377_v27, %v364_v43 }
 0x28b   :  { %v357_v48 = vpop.permute.xlu1 %356 }
 0x28c   :  { %v396_v49 = vmul.f32 0.3, %v388_v47  ;;  %v395_v50 = vmul.f32 0.3, %v387_v45  ;;  %v365_v56 = vmul.f32 %v357_v48, %v2305_v42  ;;  %v366_v57 = vmul.f32 %v357_v48, %v2307_v25 }
 0x28e   :  { %v2348_v51 = vmax.f32 %v388_v47, %v396_v49  ;;  %v2350_v52 = vmax.f32 %v387_v45, %v395_v50 }
 0x290   :  { %v381_v58 = vpop.permute.xlu1 %380  ;;  %425 = vrot.lane.b32.xlu1 %v2348_v51, %s2119_s20  ;;  %423 = vrot.lane.b32.xlu0 %v2350_v52, %s2119_s20 }
 0x291   :  { %v389_v26 = vadd.f32 %v381_v58, %v365_v56  ;;  %v390_v5 = vadd.f32 %v381_v58, %v366_v57 }
 0x293   :  { %v397_v53 = vmul.f32 0.3, %v389_v26  ;;  %v398_v61 = vmul.f32 0.3, %v390_v5 }
 0x295   :  { %v2358_v62 = vmax.f32 %v390_v5, %v398_v61  ;;  %v2360_v30 = vmax.f32 %v389_v26, %v397_v53 }
 0x297   :  { %429 = vrot.lane.b32.xlu1 %v2358_v62, %s2119_s20  ;;  %427 = vrot.lane.b32.xlu0 %v2360_v30, %s2119_s20  ;;  %v506_v42 = vpack.c.bf16 %v2358_v62, %v2348_v51  ;;  %v505_v25 = vpack.c.bf16 %v2360_v30, %v2350_v52 }
 0x29b   :  { %461 = vrot.lane.b32.xlu1 %v2334_v59, %s2121_s0  ;;  %457 = vrot.lane.b32.xlu0 %v2330_v28, %s2121_s0 }
 0x29f   :  { %459 = vrot.lane.b32.xlu1 %v2332_v35, %s2121_s0  ;;  %455 = vrot.lane.b32.xlu0 %v2326_v33, %s2121_s0 }
 0x2a3   :  { %469 = vrot.lane.b32.xlu1 %v2358_v62, %s2121_s0  ;;  %465 = vrot.lane.b32.xlu0 %v2348_v51, %s2121_s0 }
 0x2a7   :  { %467 = vrot.lane.b32.xlu1 %v2360_v30, %s2121_s0  ;;  %463 = vrot.lane.b32.xlu0 %v2350_v52, %s2121_s0  ;;  %v1995_v52 = vld [vmem:[%s2881_s2] sm:$0xff]   ;;  %v1996_v30 = vld [vmem:[%s2881_s2 + $0x8] sm:$0xff]  }
 0x2ab   :  { %512 = vperm.xlu0 %1952, %v2240_v22   ;;  %516 = vperm.xlu1 %1953, %v2232_v21  }
 0x2af   :  { %524 = vperm.xlu0 %1952, %v2253_v24   ;;  %520 = vperm.xlu1 %1953, %v2247_v23  }
 0x2f3   :  { %v416_v0 = vpop.permute.xlu1 %415 }
 0x2f4   :  { %v443_v10 = vsel %vm111_vm3, 0.0, %v416_v0 }
 0x2f5   :  { %v447_v55 = vmul.f32 %v2259_v39, %v443_v10 }
 0x2f7   :  { %v418_v3 = vpop.permute.xlu1 %417  ;;  %v420_v7 = vpop.permute.xlu0 %419 }
 0x2f8   :  { %v444_v8 = vsel %vm111_vm3, 0.0, %v420_v7  ;;  %v431_v38 = vsel %vm111_vm3, %v416_v0, %v418_v3 }
 0x2f9   :  { %v449_v15 = vmul.f32 %v2259_v39, %v444_v8  ;;  %v448_v11 = vmul.f32 %v2262_v41, %v431_v38 }
 0x2fb   :  { %v422_v9 = vpop.permute.xlu1 %421  ;;  %v499_v13 = vpack.c.bf16 %v449_v15, %v447_v55 }
 0x2fc   :  { %v432_v12 = vsel %vm111_vm3, %v420_v7, %v422_v9 }
 0x2fd   :  { %v450_v54 = vmul.f32 %v2262_v41, %v432_v12 }
 0x2ff   :  { %v500_v60 = vpack.c.bf16 %v450_v54, %v448_v11 }
 0x301   :  { %544 = vmatprep.subr.bf16.mxu0 %v500_v60 }
 0x302   :  { %545 = vmatpush1.bf16.msra.mxu0 %v499_v13  ;;  %v426_v14 = vpop.permute.xlu1 %425  ;;  %v424_v16 = vpop.permute.xlu0 %423 }
 0x303   :  { %v433_v19 = vsel %vm111_vm3, %v424_v16, %v426_v14  ;;  %v445_v1 = vsel %vm111_vm3, 0.0, %v424_v16 }
 0x304   :  { %v451_v2 = vmul.f32 %v2259_v39, %v445_v1  ;;  %v452_v34 = vmul.f32 %v2262_v41, %v433_v19 }
 0x309   :  { %v430_v20 = vpop.permute.xlu1 %429  ;;  %v428_v29 = vpop.permute.xlu0 %427 }
 0x30a   :  { %v434_v31 = vsel %vm111_vm3, %v428_v29, %v430_v20  ;;  %v446_v32 = vsel %vm111_vm3, 0.0, %v428_v29 }
 0x30b   :  { %v453_v27 = vmul.f32 %v2259_v39, %v446_v32  ;;  %v454_v37 = vmul.f32 %v2262_v41, %v434_v31 }
 0x30d   :  { %v462_v40 = vpop.permute.xlu1 %461  ;;  %v458_v43 = vpop.permute.xlu0 %457  ;;  %v502_v45 = vpack.c.bf16 %v454_v37, %v452_v34  ;;  %v501_v47 = vpack.c.bf16 %v453_v27, %v451_v2  ;;  %v2123_v37 = vmov 5  }
 0x30e   :  { %v484_v48 = vsel %vm122_vm6, %v462_v40, 0.0  ;;  %v483_v49 = vsel %vm122_vm6, %v458_v43, 0.0  ;;  %1955 = vset.pattern.permute.xlu1 %v2123_v37 }
 0x30f   :  { %546 = vmatprep.subr.bf16.mxu0 %v502_v45  ;;  %v490_v39 = vmul.f32 %v2265_v44, %v484_v48  ;;  %v488_v41 = vmul.f32 %v2265_v44, %v483_v49 }
 0x310   :  { %547 = vmatpush1.bf16.msra.mxu0 %v501_v47 }
 0x311   :  { %v460_v50 = vpop.permute.xlu1 %459  ;;  %548 = vmatprep.subr.bf16.mxu0 %v504_v6  ;;  %v456_v51 = vpop.permute.xlu0 %455  ;;  %v508_v62 = vpack.c.bf16 %v490_v39, %v488_v41 }
 0x312   :  { %v472_v56 = vsel %vm122_vm6, %v460_v50, %v462_v40  ;;  %v471_v57 = vsel %vm122_vm6, %v456_v51, %v458_v43 }
 0x313   :  { %v489_v5 = vmul.f32 %v2268_v46, %v472_v56  ;;  %v487_v28 = vmul.f32 %v2268_v46, %v471_v57 }
 0x314   :  { %549 = vmatpush1.bf16.msra.mxu0 %v503_v36 }
 0x315   :  { %v470_v58 = vpop.permute.xlu1 %469  ;;  %v466_v26 = vpop.permute.xlu0 %465  ;;  %550 = vmatprep.subr.bf16.mxu0 %v506_v42  ;;  %v507_v63 = vpack.c.bf16 %v489_v5, %v487_v28 }
 0x316   :  { %v486_v59 = vsel %vm122_vm6, %v470_v58, 0.0  ;;  %v485_v6 = vsel %vm122_vm6, %v466_v26, 0.0 }
 0x317   :  { %v494_v53 = vmul.f32 %v2265_v44, %v486_v59  ;;  %v492_v61 = vmul.f32 %v2265_v44, %v485_v6 }
 0x318   :  { %551 = vmatpush1.bf16.msra.mxu0 %v505_v25 }
 0x319   :  { %v468_v33 = vpop.permute.xlu1 %467  ;;  %v464_v35 = vpop.permute.xlu0 %463  ;;  %552 = vmatprep.subr.bf16.mxu0 %v508_v62  ;;  %v510_v7 = vpack.c.bf16 %v494_v53, %v492_v61 }
 0x31a   :  { %v474_v36 = vsel %vm122_vm6, %v468_v33, %v470_v58  ;;  %v473_v42 = vsel %vm122_vm6, %v464_v35, %v466_v26 }
 0x31b   :  { %v493_v0 = vmul.f32 %v2268_v46, %v474_v36  ;;  %v491_v3 = vmul.f32 %v2268_v46, %v473_v42 }
 0x31c   :  { %553 = vmatpush1.bf16.msra.mxu0 %v507_v63 }
 0x31d   :  { %554 = vmatprep.subr.bf16.mxu0 %v510_v7  ;;  %v509_v44 = vpack.c.bf16 %v493_v0, %v491_v3  ;;  %v2124_v7 = vmov 4  }
 0x31e   :  { %1954 = vset.pattern.permute.xlu0 %v2124_v7 }
 0x320   :  { %555 = vmatpush1.bf16.msra.mxu0 %v509_v44 }
 0x323   :  { %1790 = vmatmul.mubr.msk.bf16.vlgmr.msra.gmra.mrb[0].mxu0 %vm537_vm8, %v1995_v52 }
 0x324   :  { %586 = vmatprep.mubr.bf16.mxu0 %v2118_v4 }
 0x32a   :  { %v513_v46 = vpop.permute.xlu0 %512  ;;  %v517_v8 = vpop.permute.xlu1 %516 }
 0x32b   :  { %1791 = vmatmul.mubr.msk.bf16.gmra.mrb[4].mxu0 %vm537_vm8, %v1996_v30 }
 0x32e   :  { %v521_v13 = vpop.permute.xlu1 %520  ;;  %v525_v1 = vpop.permute.xlu0 %524 }
 0x3f6   :  { %v578_v25 = vpop.f32.mrb[0].mxu0 }
 0x3f7   :  { %v579_v38 = vadd.f32 %v578_v25, %v513_v46  ;;  %v580_v10 = vpop.f32.mrb[1].mxu0 }
 0x3f8   :  { %v581_v9 = vadd.f32 %v580_v10, %v513_v46  ;;  %v582_v12 = vpop.f32.mrb[2].mxu0 }
 0x3f9   :  { %v583_v15 = vadd.f32 %v582_v12, %v517_v8  ;;  %v584_v11 = vpop.f32.mrb[3].mxu0 }
 0x3fa   :  { %v585_v54 = vadd.f32 %v584_v11, %v517_v8  ;;  %v597_v55 = vadd.f32 %v581_v9, %v579_v38 }
 0x3fc   :  { %598 = vadd.xlane.f32.xlu1 %v597_v55  ;;  %v600_v60 = vadd.f32 %v585_v54, %v583_v15 }
 0x3fe   :  { %v588_v14 = vpop.f32.mrb[4].mxu0  ;;  %601 = vadd.xlane.f32.xlu0 %v600_v60 }
 0x3ff   :  { %v589_v16 = vadd.f32 %v588_v14, %v521_v13  ;;  %v590_v19 = vpop.f32.mrb[5].mxu0 }
 0x400   :  { %v591_v20 = vadd.f32 %v590_v19, %v521_v13  ;;  %v592_v29 = vpop.f32.mrb[6].mxu0 }
 0x401   :  { %v593_v31 = vadd.f32 %v592_v29, %v525_v1  ;;  %v594_v32 = vpop.f32.mrb[7].mxu0  ;;  %v742_v29 = vld [vmem:[#allocation2 + $0x88] sm:$0xff] }
 0x402   :  { %v595_v2 = vadd.f32 %v594_v32, %v525_v1  ;;  %v603_v34 = vadd.f32 %v591_v20, %v589_v16  ;;  %v726_v32 = vld [vmem:[#allocation2 + $0x8] sm:$0xff] }
 0x404   :  { %604 = vadd.xlane.f32.xlu0 %v603_v34  ;;  %v606_v27 = vadd.f32 %v595_v2, %v593_v31 }
 0x406   :  { %607 = vadd.xlane.f32.xlu1 %v606_v27 }
 0x489   :  { %v599_v40 = vpop.xlane.xlu1 %598 }
 0x48a   :  { %v609_v43 = vmul.f32 0.00390625, %v599_v40  ;;  %v727_v40 = vld [vmem:[#allocation2 + $0x10] sm:$0xff] }
 0x48b   :  { %v602_v45 = vpop.xlane.xlu0 %601 }
 0x48c   :  { %v2441_v47 = vsub.f32 %v579_v38, %v609_v43  ;;  %v2443_v48 = vsub.f32 %v581_v9, %v609_v43  ;;  %v610_v49 = vmul.f32 0.00390625, %v602_v45  ;;  %v745_v43 = vld [vmem:[#allocation2 + $0xa0] sm:$0xff]  ;;  %v746_v45 = vld [vmem:[#allocation2 + $0xa8] sm:$0xff] }
 0x48e   :  { %v2445_v50 = vsub.f32 %v583_v15, %v610_v49  ;;  %v2447_v51 = vsub.f32 %v585_v54, %v610_v49  ;;  %v621_v39 = vmul.f32 %v2441_v47, %v2441_v47  ;;  %v622_v41 = vmul.f32 %v2443_v48, %v2443_v48 }
 0x490   :  { %v629_v56 = vadd.f32 %v622_v41, %v621_v39  ;;  %v623_v57 = vmul.f32 %v2445_v50, %v2445_v50  ;;  %v624_v58 = vmul.f32 %v2447_v51, %v2447_v51  ;;  %v729_v39 = vld [vmem:[#allocation2 + $0x20] sm:$0xff]  ;;  %v747_v41 = vld [vmem:[#allocation2 + $0xb0] sm:$0xff] }
 0x491   :  { %v605_v26 = vpop.xlane.xlu0 %604 }
 0x492   :  { %v611_v5 = vmul.f32 0.00390625, %v605_v26  ;;  %630 = vadd.xlane.f32.xlu0 %v629_v56  ;;  %v632_v28 = vadd.f32 %v624_v58, %v623_v57  ;;  %v748_v56 = vld [vmem:[#allocation2 + $0xb8] sm:$0xff]  ;;  %v731_v26 = vld [vmem:[#allocation2 + $0x30] sm:$0xff] }
 0x493   :  { %v608_v59 = vpop.xlane.xlu1 %607  ;;  %v1900_v58 = vpack.c.bf16 %v748_v56, %v747_v41 }
 0x494   :  { %v2457_v6 = vsub.f32 %v589_v16, %v611_v5  ;;  %v2459_v53 = vsub.f32 %v591_v20, %v611_v5  ;;  %v612_v61 = vmul.f32 0.00390625, %v608_v59  ;;  %633 = vadd.xlane.f32.xlu1 %v632_v28  ;;  %v741_v20 = vld [vmem:[#allocation2 + $0x80] sm:$0xff]  ;;  %v732_v5 = vld [vmem:[#allocation2 + $0x38] sm:$0xff]  ;;  %v750_v59 = vld [vmem:[#allocation2 + $0xc8] sm:$0xff] }
 0x495   :  { %v749_v28 = vld [vmem:[#allocation2 + $0xc0] sm:$0xff] }
 0x496   :  { %v2461_v62 = vsub.f32 %v593_v31, %v612_v61  ;;  %v2463_v33 = vsub.f32 %v595_v2, %v612_v61  ;;  %v625_v35 = vmul.f32 %v2457_v6, %v2457_v6  ;;  %v626_v36 = vmul.f32 %v2459_v53, %v2459_v53  ;;  %v743_v2 = vld [vmem:[#allocation2 + $0x90] sm:$0xff] }
 0x497   :  { %v1888_v31 = vpack.c.bf16 %v742_v29, %v741_v20  ;;  %v1902_v61 = vpack.c.bf16 %v732_v5, %v731_v26 }
 0x498   :  { %v635_v42 = vadd.f32 %v626_v36, %v625_v35  ;;  %v627_v63 = vmul.f32 %v2461_v62, %v2461_v62  ;;  %v628_v0 = vmul.f32 %v2463_v33, %v2463_v33  ;;  %v1904_v35 = vpack.c.bf16 %v750_v59, %v749_v28  ;;  %v733_v36 = vld [vmem:[#allocation2 + $0x40] sm:$0xff] }
 0x499   :  { %1889 = vmatprep.subr.bf16.mxu0 %v1888_v31 }
 0x49a   :  { %636 = vadd.xlane.f32.xlu0 %v635_v42  ;;  %v638_v3 = vadd.f32 %v628_v0, %v627_v63  ;;  %v734_v42 = vld [vmem:[#allocation2 + $0x48] sm:$0xff]  ;;  %v751_v63 = vld [vmem:[#allocation2 + $0xd0] sm:$0xff]  ;;  %v752_v0 = vld [vmem:[#allocation2 + $0xd8] sm:$0xff] }
 0x49c   :  { %639 = vadd.xlane.f32.xlu1 %v638_v3  ;;  %v1906_v3 = vpack.c.bf16 %v734_v42, %v733_v36 }
 0x4ad   :  { %686 = vperm.xlu1 %1955, %v2240_v22  }
 0x4b1   :  { %690 = vperm.xlu1 %1955, %v2232_v21  }
 0x4b5   :  { %694 = vperm.xlu1 %1955, %v2247_v23  }
 0x4b9   :  { %1956 = vset.pattern.permute.xlu1 %v2124_v7  ;;  %v1908_v7 = vpack.c.bf16 %v752_v0, %v751_v63 }
 0x51f   :  { %v631_v44 = vpop.xlane.xlu0 %630 }
 0x520   :  { %v641_v52 = vmul.f32 0.00390625, %v631_v44  ;;  %v735_v44 = vld [vmem:[#allocation2 + $0x50] sm:$0xff] }
 0x521   :  { %v634_v30 = vpop.xlane.xlu1 %633 }
 0x522   :  { %v645_v46 = vadd.f32 1e-05, %v641_v52  ;;  %v642_v25 = vmul.f32 0.00390625, %v634_v30  ;;  %v736_v52 = vld [vmem:[#allocation2 + $0x58] sm:$0xff]  ;;  %v753_v30 = vld [vmem:[#allocation2 + $0xe0] sm:$0xff] }
 0x524   :  { %2021 = vrsqrt.f32 %v645_v46  ;;  %v646_v8 = vadd.f32 1e-05, %v642_v25  ;;  %v754_v46 = vld [vmem:[#allocation2 + $0xe8] sm:$0xff]  ;;  %v1910_v25 = vpack.c.bf16 %v736_v52, %v735_v44 }
 0x526   :  { %2023 = vrsqrt.f32 %v646_v8  ;;  %v1912_v8 = vpack.c.bf16 %v754_v46, %v753_v30 }
 0x527   :  { %v637_v38 = vpop.xlane.xlu0 %636 }
 0x528   :  { %v643_v10 = vmul.f32 0.00390625, %v637_v38  ;;  %v737_v38 = vld [vmem:[#allocation2 + $0x60] sm:$0xff] }
 0x529   :  { %v640_v9 = vpop.xlane.xlu1 %639 }
 0x52a   :  { %v647_v12 = vadd.f32 1e-05, %v643_v10  ;;  %v644_v15 = vmul.f32 0.00390625, %v640_v9  ;;  %v738_v10 = vld [vmem:[#allocation2 + $0x68] sm:$0xff] }
 0x52b   :  { %v1914_v9 = vpack.c.bf16 %v738_v10, %v737_v38 }
 0x52c   :  { %2025 = vrsqrt.f32 %v647_v12  ;;  %v648_v11 = vadd.f32 1e-05, %v644_v15 }
 0x52d   :  { %v687_v12 = vpop.permute.xlu1 %686 }
 0x52e   :  { %v2022_v54 = vpop.eup %2021  ;;  %2027 = vrsqrt.f32 %v648_v11 }
 0x52f   :  { %v653_v55 = vmul.f32 %v2022_v54, %v2240_v22  ;;  %v725_v22 = vld [vmem:[#allocation2] sm:$0xff]  ;;  %v755_v54 = vld [vmem:[#allocation2 + $0xf0] sm:$0xff] }
 0x530   :  { %v2024_v60 = vpop.eup %2023  ;;  %v1890_v34 = vpack.c.bf16 %v726_v32, %v725_v22 }
 0x531   :  { %659 = vperm.xlu0 %1954, %v653_v55   ;;  %v654_v13 = vmul.f32 %v2024_v60, %v2232_v21  ;;  %v744_v21 = vld [vmem:[#allocation2 + $0x98] sm:$0xff]  ;;  %v691_v15 = vpop.permute.xlu1 %690 }
 0x532   :  { %v1892_v27 = vpack.c.bf16 %v744_v21, %v743_v2  ;;  %1891 = vmatpush3.bf16.msra.mxu0 %v1890_v34  ;;  %v756_v55 = vld [vmem:[#allocation2 + $0xf8] sm:$0xff] }
 0x533   :  { %664 = vperm.xlu1 %1956, %v654_v13   ;;  %v1916_v60 = vpack.c.bf16 %v756_v55, %v755_v54  ;;  %v739_v13 = vld [vmem:[#allocation2 + $0x70] sm:$0xff] }
 0x534   :  { %1893 = vmatprep.subr.bf16.mxu0 %v1892_v27 }
 0x535   :  { %v695_v11 = vpop.permute.xlu1 %694 }
 0x536   :  { %v2026_v14 = vpop.eup %2025 }
 0x537   :  { %v655_v16 = vmul.f32 %v2026_v14, %v2247_v23  ;;  %v728_v23 = vld [vmem:[#allocation2 + $0x18] sm:$0xff] }
 0x538   :  { %v2028_v19 = vpop.eup %2027  ;;  %v1894_v49 = vpack.c.bf16 %v728_v23, %v727_v40  ;;  %v740_v14 = vld [vmem:[#allocation2 + $0x78] sm:$0xff] }
 0x539   :  { %669 = vperm.xlu1 %1956, %v655_v16   ;;  %v656_v1 = vmul.f32 %v2028_v19, %v2253_v24  ;;  %v1918_v19 = vpack.c.bf16 %v740_v14, %v739_v13 }
 0x53a   :  { %1895 = vmatpush3.bf16.msra.mxu0 %v1894_v49 }
 0x53d   :  { %674 = vperm.xlu1 %1956, %v656_v1  }
 0x541   :  { %1957 = vset.pattern.permute.xlu1 %v2123_v37  ;;  %v1896_v37 = vpack.c.bf16 %v746_v45, %v745_v43 }
 0x542   :  { %698 = vperm.xlu1 %1957, %v2253_v24   ;;  %v730_v24 = vld [vmem:[#allocation2 + $0x28] sm:$0xff] }
 0x543   :  { %v1898_v57 = vpack.c.bf16 %v730_v24, %v729_v39  ;;  %1897 = vmatprep.subr.bf16.mxu0 %v1896_v37 }
 0x545   :  { %1899 = vmatpush3.bf16.msra.mxu0 %v1898_v57 }
 0x546   :  { %1901 = vmatprep.subr.bf16.mxu0 %v1900_v58 }
 0x549   :  { %1903 = vmatpush3.bf16.msra.mxu0 %v1902_v61 }
 0x54a   :  { %1905 = vmatprep.subr.bf16.mxu0 %v1904_v35 }
 0x54d   :  { %1907 = vmatpush3.bf16.msra.mxu0 %v1906_v3 }
 0x54e   :  { %1909 = vmatprep.subr.bf16.mxu0 %v1908_v7 }
 0x551   :  { %1911 = vmatpush3.bf16.msra.mxu0 %v1910_v25 }
 0x552   :  { %1913 = vmatprep.subr.bf16.mxu0 %v1912_v8 }
 0x555   :  { %1915 = vmatpush3.bf16.msra.mxu0 %v1914_v9 }
 0x556   :  { %1917 = vmatprep.subr.bf16.mxu0 %v1916_v60 }
 0x559   :  { %1919 = vmatpush3.bf16.msra.mxu0 %v1918_v19 }
 0x5b0   :  { %v660_v16 = vpop.permute.xlu0 %659 }
 0x5b1   :  { %v677_v1 = vmul.f32 %v660_v16, %v2441_v47  ;;  %v678_v20 = vmul.f32 %v660_v16, %v2443_v48 }
 0x5b2   :  { %v665_v29 = vpop.permute.xlu1 %664 }
 0x5b3   :  { %v701_v22 = vadd.f32 %v687_v12, %v677_v1  ;;  %v702_v31 = vadd.f32 %v687_v12, %v678_v20  ;;  %v679_v32 = vmul.f32 %v665_v29, %v2445_v50  ;;  %v680_v2 = vmul.f32 %v665_v29, %v2447_v51 }
 0x5b5   :  { %v709_v21 = vmul.f32 0.3, %v701_v22  ;;  %v710_v34 = vmul.f32 0.3, %v702_v31  ;;  %v703_v27 = vadd.f32 %v691_v15, %v679_v32  ;;  %v704_v40 = vadd.f32 %v691_v15, %v680_v2 }
 0x5b7   :  { %v717_v23 = vmax.f32 %v701_v22, %v709_v21  ;;  %v718_v43 = vmax.f32 %v702_v31, %v710_v34  ;;  %v711_v45 = vmul.f32 0.3, %v703_v27  ;;  %v712_v49 = vmul.f32 0.3, %v704_v40 }
 0x5b8   :  { %v670_v47 = vpop.permute.xlu1 %669 }
 0x5b9   :  { %v681_v48 = vmul.f32 %v670_v47, %v2457_v6  ;;  %v682_v37 = vmul.f32 %v670_v47, %v2459_v53  ;;  %v1958_v39 = vpack.i.bf16 %v718_v43, %v717_v23  ;;  %v719_v24 = vmax.f32 %v703_v27, %v711_v45 }
 0x5ba   :  { %v720_v41 = vmax.f32 %v704_v40, %v712_v49 }
 0x5bb   :  { %v705_v56 = vadd.f32 %v695_v11, %v681_v48  ;;  %v706_v50 = vadd.f32 %v695_v11, %v682_v37  ;;  %1959 = vrot.lane.b32.xlu0 %v1958_v39, %s2121_s0 }
 0x5bc   :  { %v675_v51 = vpop.permute.xlu1 %674  ;;  %v1963_v57 = vpack.i.bf16 %v720_v41, %v719_v24 }
 0x5bd   :  { %v713_v58 = vmul.f32 0.3, %v705_v56  ;;  %v714_v26 = vmul.f32 0.3, %v706_v50  ;;  %v683_v59 = vmul.f32 %v675_v51, %v2461_v62  ;;  %v684_v6 = vmul.f32 %v675_v51, %v2463_v33  ;;  %v2522_v51 = vld [vmem:[%s2884_s5 + $0x8] sm:$0xff] }
 0x5be   :  { %1964 = vrot.lane.b32.xlu1 %v1963_v57, %s2121_s0  ;;  %v2125_v57 = vmov 6  }
 0x5bf   :  { %v721_v5 = vmax.f32 %v705_v56, %v713_v58  ;;  %v722_v28 = vmax.f32 %v706_v50, %v714_v26  ;;  %v1997_v56 = vld [vmem:[%s2882_s3] sm:$0xff]   ;;  %1978 = vset.pattern.permute.xlu0 %v2125_v57  ;;  %1979 = vset.pattern.permute.xlu1 %v2125_v57  ;;  %v2529_v58 = vld [vmem:[%s2884_s5 + $0x18] sm:$0xff]  ;;  %v2534_v26 = vld [vmem:[%s2884_s5 + $0x10] sm:$0xff] }
 0x5c0   :  { %v2517_v50 = vld [vmem:[%s2884_s5] sm:$0xff] }
 0x5c1   :  { %v699_v53 = vpop.permute.xlu1 %698  ;;  %v1968_v61 = vpack.i.bf16 %v722_v28, %v721_v5 }
 0x5c2   :  { %v707_v35 = vadd.f32 %v699_v53, %v683_v59  ;;  %v708_v36 = vadd.f32 %v699_v53, %v684_v6  ;;  %v2553_v59 = vld [vmem:[%s2884_s5 + $0x38] sm:$0xff]  ;;  %v2558_v6 = vld [vmem:[%s2884_s5 + $0x30] sm:$0xff] }
 0x5c3   :  { %1969 = vrot.lane.b32.xlu0 %v1968_v61, %s2121_s0 }
 0x5c4   :  { %v715_v42 = vmul.f32 0.3, %v707_v35  ;;  %v716_v63 = vmul.f32 0.3, %v708_v36 }
 0x5c6   :  { %v723_v0 = vmax.f32 %v707_v35, %v715_v42  ;;  %v724_v3 = vmax.f32 %v708_v36, %v716_v63 }
 0x5c8   :  { %v1973_v7 = vpack.i.bf16 %v724_v3, %v723_v0 }
 0x5ca   :  { %1974 = vrot.lane.b32.xlu1 %v1973_v7, %s2121_s0 }
 0x62d   :  { %v1960_v44 = vpop.permute.xlu0 %1959 }
 0x62e   :  { %v1962_v52 = vunpack.i.h.bf16 %v1960_v44  ;;  %v1961_v30 = vunpack.i.l.bf16 %v1960_v44 }
 0x630   :  { %v781_v62 = vsel %vm122_vm6, %v1961_v30, %v1962_v52  ;;  %v1965_v46 = vpop.permute.xlu1 %1964  ;;  %v797_v33 = vsel %vm122_vm6, %v1962_v52, %v1961_v30 }
 0x631   :  { %v801_v25 = vmax.f32 %v717_v23, %v781_v62  ;;  %v1967_v8 = vunpack.i.h.bf16 %v1965_v46  ;;  %v1966_v38 = vunpack.i.l.bf16 %v1965_v46  ;;  %v802_v10 = vmax.f32 %v718_v43, %v797_v33 }
 0x633   :  { %873 = vmatprep.mubr.f32.mxu0 %v802_v10  ;;  %v798_v9 = vsel %vm122_vm6, %v1967_v8, %v1966_v38  ;;  %v782_v12 = vsel %vm122_vm6, %v1966_v38, %v1967_v8 }
 0x634   :  { %874 = vmatmul.mubr.f32.vlgmr.msra.gmra.mrb[8].mxu0 %v801_v25  ;;  %v804_v15 = vmax.f32 %v720_v41, %v798_v9  ;;  %v803_v60 = vmax.f32 %v719_v24, %v782_v12 }
 0x635   :  { %v1970_v11 = vpop.permute.xlu0 %1969 }
 0x636   :  { %v1972_v54 = vunpack.i.h.bf16 %v1970_v11  ;;  %v1971_v55 = vunpack.i.l.bf16 %v1970_v11  ;;  %878 = vmatprep.mubr.f32.mxu0 %v804_v15 }
 0x638   :  { %879 = vmatmul.mubr.f32.gmra.mrb[10].mxu0 %v803_v60  ;;  %v799_v13 = vsel %vm122_vm6, %v1972_v54, %v1971_v55  ;;  %v783_v14 = vsel %vm122_vm6, %v1971_v55, %v1972_v54 }
 0x639   :  { %v806_v16 = vmax.f32 %v722_v28, %v799_v13  ;;  %v805_v19 = vmax.f32 %v721_v5, %v783_v14  ;;  %v2541_v5 = vld [vmem:[%s2884_s5 + $0x28] sm:$0xff]  ;;  %v2546_v28 = vld [vmem:[%s2884_s5 + $0x20] sm:$0xff] }
 0x63b   :  { %883 = vmatprep.mubr.f32.mxu0 %v806_v16  ;;  %v1998_v16 = vld [vmem:[%s2882_s3 + $0x8] sm:$0xff]  }
 0x63c   :  { %v1975_v1 = vpop.permute.xlu1 %1974  ;;  %884 = vmatmul.mubr.f32.gmra.mrb[12].mxu0 %v805_v19  ;;  %v1999_v19 = vld [vmem:[%s2882_s3 + $0x10] sm:$0xff]  }
 0x63d   :  { %v1977_v20 = vunpack.i.h.bf16 %v1975_v1  ;;  %v1976_v29 = vunpack.i.l.bf16 %v1975_v1  ;;  %v2000_v1 = vld [vmem:[%s2882_s3 + $0x18] sm:$0xff]  }
 0x63f   :  { %v800_v22 = vsel %vm122_vm6, %v1977_v20, %v1976_v29  ;;  %v784_v31 = vsel %vm122_vm6, %v1976_v29, %v1977_v20 }
 0x640   :  { %v808_v32 = vmax.f32 %v724_v3, %v800_v22  ;;  %v807_v2 = vmax.f32 %v723_v0, %v784_v31 }
 0x642   :  { %888 = vmatprep.mubr.f32.mxu0 %v808_v32 }
 0x643   :  { %889 = vmatmul.mubr.f32.gmra.mrb[14].mxu0 %v807_v2 }
 0x644   :  { %1880 = vmatprep.mubr.msk.bf16.mxu0 %vm537_vm8, %v1997_v56 }
 0x707   :  { %v1846_v21 = vpop.f32.mrb[8].mxu0 }
 0x708   :  { %v1847_v34 = vpop.f32.mrb[9].mxu0 }
 0x709   :  { %v1848_v27 = vadd.f32 %v1847_v34, %v1846_v21 }
 0x70b   :  { %930 = vrot.lane.b32.xlu0 %v1848_v27, %s2119_s20  ;;  %v1849_v40 = vpop.f32.mrb[10].mxu0 }
 0x70c   :  { %v1850_v23 = vpop.f32.mrb[11].mxu0 }
 0x70d   :  { %v1851_v43 = vadd.f32 %v1850_v23, %v1849_v40 }
 0x70f   :  { %v1852_v45 = vpop.f32.mrb[12].mxu0  ;;  %932 = vrot.lane.b32.xlu1 %v1851_v43, %s2119_s20  ;;  %v980_v49 = vpack.c.bf16 %v1851_v43, %v1848_v27 }
 0x710   :  { %v1853_v47 = vpop.f32.mrb[13].mxu0 }
 0x711   :  { %v1854_v48 = vadd.f32 %v1853_v47, %v1852_v45 }
 0x713   :  { %934 = vrot.lane.b32.xlu0 %v1854_v48, %s2119_s20 }
 0x716   :  { %v1855_v37 = vpop.f32.mrb[14].mxu0 }
 0x717   :  { %v1856_v39 = vpop.f32.mrb[15].mxu0  ;;  %950 = vrot.lane.b32.xlu0 %v1848_v27, %s2121_s0 }
 0x718   :  { %v1857_v24 = vadd.f32 %v1856_v39, %v1855_v37 }
 0x71a   :  { %936 = vrot.lane.b32.xlu1 %v1857_v24, %s2119_s20  ;;  %v981_v41 = vpack.c.bf16 %v1857_v24, %v1854_v48 }
 0x71b   :  { %954 = vrot.lane.b32.xlu0 %v1854_v48, %s2121_s0 }
 0x71e   :  { %952 = vrot.lane.b32.xlu1 %v1851_v43, %s2121_s0 }
 0x71f   :  { %986 = vperm.xlu0 %1978, %v2517_v50  }
 0x722   :  { %956 = vrot.lane.b32.xlu1 %v1857_v24, %s2121_s0 }
 0x723   :  { %1001 = vperm.xlu0 %1978, %v2529_v58  }
 0x726   :  { %991 = vperm.xlu1 %1979, %v2522_v51  }
 0x727   :  { %1011 = vperm.xlu0 %1978, %v2541_v5  }
 0x72a   :  { %996 = vperm.xlu1 %1979, %v2534_v26  }
 0x72b   :  { %1021 = vperm.xlu0 %1978, %v2553_v59  }
 0x72e   :  { %1006 = vperm.xlu1 %1979, %v2546_v28  }
 0x732   :  { %1016 = vperm.xlu1 %1979, %v2558_v6  }
 0x77d   :  { %v931_v53 = vpop.permute.xlu0 %930 }
 0x77e   :  { %v942_v61 = vsel %vm111_vm3, 0.0, %v931_v53 }
 0x77f   :  { %v946_v42 = vmul.f32 %v2209_v17, %v942_v61 }
 0x781   :  { %v933_v35 = vpop.permute.xlu1 %932 }
 0x782   :  { %v943_v36 = vsel %vm111_vm3, 0.0, %v933_v35  ;;  %v2126_v35 = vmov 8  }
 0x783   :  { %v947_v63 = vmul.f32 %v2209_v17, %v943_v36  ;;  %1980 = vset.pattern.permute.xlu1 %v2126_v35 }
 0x785   :  { %v978_v0 = vpack.c.bf16 %v947_v63, %v946_v42  ;;  %v935_v3 = vpop.permute.xlu0 %934 }
 0x786   :  { %v944_v7 = vsel %vm111_vm3, 0.0, %v935_v3 }
 0x787   :  { %1868 = vmatprep.subr.bf16.mxu0 %v978_v0  ;;  %v948_v30 = vmul.f32 %v2209_v17, %v944_v7 }
 0x788   :  { %1869 = vmatpush3.bf16.msra.mxu0 %v978_v0 }
 0x789   :  { %v951_v46 = vpop.permute.xlu0 %950 }
 0x78a   :  { %v962_v10 = vsel %vm122_vm6, %v951_v46, 0.0 }
 0x78b   :  { %v966_v11 = vmul.f32 %v2211_v18, %v962_v10 }
 0x78c   :  { %v937_v44 = vpop.permute.xlu1 %936 }
 0x78d   :  { %v945_v52 = vsel %vm111_vm3, 0.0, %v937_v44  ;;  %v955_v9 = vpop.permute.xlu0 %954 }
 0x78e   :  { %v949_v62 = vmul.f32 %v2209_v17, %v945_v52  ;;  %v964_v54 = vsel %vm122_vm6, %v955_v9, 0.0 }
 0x78f   :  { %v968_v13 = vmul.f32 %v2211_v18, %v964_v54 }
 0x790   :  { %v953_v33 = vpop.permute.xlu1 %952  ;;  %v979_v25 = vpack.c.bf16 %v949_v62, %v948_v30 }
 0x791   :  { %v963_v8 = vsel %vm122_vm6, %v953_v33, 0.0 }
 0x792   :  { %1870 = vmatprep.subr.bf16.mxu0 %v979_v25  ;;  %v967_v12 = vmul.f32 %v2211_v18, %v963_v8 }
 0x793   :  { %1871 = vmatpush3.bf16.msra.mxu0 %v979_v25 }
 0x794   :  { %v957_v38 = vpop.permute.xlu1 %956  ;;  %1872 = vmatprep.subr.bf16.mxu0 %v980_v49  ;;  %v982_v60 = vpack.c.bf16 %v967_v12, %v966_v11 }
 0x795   :  { %v965_v15 = vsel %vm122_vm6, %v957_v38, 0.0 }
 0x796   :  { %v969_v55 = vmul.f32 %v2211_v18, %v965_v15 }
 0x797   :  { %1873 = vmatpush3.bf16.msra.mxu0 %v980_v49 }
 0x798   :  { %1874 = vmatprep.subr.bf16.mxu0 %v981_v41  ;;  %v983_v14 = vpack.c.bf16 %v969_v55, %v968_v13 }
 0x79b   :  { %1875 = vmatpush3.bf16.msra.mxu0 %v981_v41 }
 0x79c   :  { %1876 = vmatprep.subr.bf16.mxu0 %v982_v60 }
 0x79e   :  { %v987_v20 = vpop.permute.xlu0 %986 }
 0x79f   :  { %1877 = vmatpush3.bf16.msra.mxu0 %v982_v60 }
 0x7a0   :  { %1878 = vmatprep.subr.bf16.mxu0 %v983_v14 }
 0x7a2   :  { %v1002_v32 = vpop.permute.xlu0 %1001 }
 0x7a3   :  { %1879 = vmatpush3.bf16.msra.mxu0 %v983_v14 }
 0x7a5   :  { %v992_v29 = vpop.permute.xlu1 %991 }
 0x7a6   :  { %1881 = vmatmul.mubr.msk.bf16.vlgmr.msra.gmra.mrb[16].mxu0 %vm537_vm8, %v1998_v16  ;;  %v1012_v43 = vpop.permute.xlu0 %1011 }
 0x7a7   :  { %1884 = vmatprep.mubr.msk.bf16.mxu0 %vm537_vm8, %v1999_v19 }
 0x7a9   :  { %v997_v34 = vpop.permute.xlu1 %996 }
 0x7aa   :  { %v1022_v56 = vpop.permute.xlu0 %1021 }
 0x7ad   :  { %v1007_v47 = vpop.permute.xlu1 %1006 }
 0x7ae   :  { %1885 = vmatmul.mubr.msk.bf16.gmra.mrb[20].mxu0 %vm537_vm8, %v2000_v1 }
 0x7b1   :  { %v1017_v57 = vpop.permute.xlu1 %1016 }
 0x879   :  { %v1882_v22 = vpop.f32.mrb[16].mxu0 }
 0x87a   :  { %v1090_v31 = vpop.f32.mrb[17].mxu0  ;;  %v1099_v45 = vadd.f32 %v1882_v22, %v997_v34 }
 0x87b   :  { %v1091_v2 = vadd.f32 %v1090_v31, %v987_v20  ;;  %v1883_v21 = vpop.f32.mrb[18].mxu0 }
 0x87c   :  { %v1093_v27 = vpop.f32.mrb[19].mxu0  ;;  %v1102_v23 = vadd.f32 %v1883_v21, %v1002_v32  ;;  %v2127_v32 = vmov 7  }
 0x87d   :  { %v1094_v40 = vadd.f32 %v1093_v27, %v992_v29  ;;  %1121 = vadd.xlane.f32.xlu1 %v1091_v2  ;;  %1982 = vset.pattern.permute.xlu0 %v2127_v32 }
 0x87f   :  { %1123 = vadd.xlane.f32.xlu0 %v1094_v40 }
 0x881   :  { %v1886_v49 = vpop.f32.mrb[20].mxu0  ;;  %1127 = vadd.xlane.f32.xlu1 %v1102_v23 }
 0x882   :  { %v1106_v48 = vpop.f32.mrb[21].mxu0  ;;  %v1115_v53 = vadd.f32 %v1886_v49, %v1017_v57 }
 0x883   :  { %v1887_v37 = vpop.f32.mrb[22].mxu0  ;;  %1125 = vadd.xlane.f32.xlu0 %v1099_v45  ;;  %v1107_v24 = vadd.f32 %v1106_v48, %v1007_v47 }
 0x884   :  { %v1109_v39 = vpop.f32.mrb[23].mxu0  ;;  %v1118_v61 = vadd.f32 %v1887_v37, %v1022_v56 }
 0x885   :  { %v1110_v41 = vadd.f32 %v1109_v39, %v1012_v43 }
 0x887   :  { %1129 = vadd.xlane.f32.xlu0 %v1107_v24  ;;  %1131 = vadd.xlane.f32.xlu1 %v1110_v41 }
 0x88b   :  { %1133 = vadd.xlane.f32.xlu0 %v1115_v53  ;;  %1135 = vadd.xlane.f32.xlu1 %v1118_v61 }
 0x90a   :  { %v1122_v36 = vpop.xlane.xlu1 %1121 }
 0x90b   :  { %v1137_v42 = vmul.f32 0.0078125, %v1122_v36 }
 0x90c   :  { %v1124_v63 = vpop.xlane.xlu0 %1123 }
 0x90d   :  { %v1138_v0 = vmul.f32 0.0078125, %v1124_v63  ;;  %v2591_v3 = vsub.f32 %v1091_v2, %v1137_v42 }
 0x90e   :  { %v1128_v7 = vpop.xlane.xlu1 %1127 }
 0x90f   :  { %v2593_v44 = vsub.f32 %v1094_v40, %v1138_v0  ;;  %v1140_v52 = vmul.f32 0.0078125, %v1128_v7  ;;  %v1153_v30 = vmul.f32 %v2591_v3, %v2591_v3 }
 0x910   :  { %v1126_v62 = vpop.xlane.xlu0 %1125 }
 0x911   :  { %v2597_v46 = vsub.f32 %v1102_v23, %v1140_v52  ;;  %v1139_v33 = vmul.f32 0.0078125, %v1126_v62  ;;  %1161 = vadd.xlane.f32.xlu0 %v1153_v30  ;;  %v1154_v25 = vmul.f32 %v2593_v44, %v2593_v44 }
 0x913   :  { %v2601_v8 = vsub.f32 %v1099_v45, %v1139_v33  ;;  %1163 = vadd.xlane.f32.xlu1 %v1154_v25  ;;  %v1156_v11 = vmul.f32 %v2597_v46, %v2597_v46 }
 0x914   :  { %v1130_v38 = vpop.xlane.xlu0 %1129  ;;  %v1132_v10 = vpop.xlane.xlu1 %1131 }
 0x915   :  { %v1141_v9 = vmul.f32 0.0078125, %v1130_v38  ;;  %v1142_v12 = vmul.f32 0.0078125, %v1132_v10  ;;  %v1155_v15 = vmul.f32 %v2601_v8, %v2601_v8 }
 0x917   :  { %v2607_v54 = vsub.f32 %v1107_v24, %v1141_v9  ;;  %v2609_v55 = vsub.f32 %v1110_v41, %v1142_v12  ;;  %1165 = vadd.xlane.f32.xlu0 %v1155_v15  ;;  %1167 = vadd.xlane.f32.xlu1 %v1156_v11 }
 0x918   :  { %v1134_v60 = vpop.xlane.xlu0 %1133  ;;  %v1136_v13 = vpop.xlane.xlu1 %1135 }
 0x919   :  { %v1143_v14 = vmul.f32 0.0078125, %v1134_v60  ;;  %v1144_v16 = vmul.f32 0.0078125, %v1136_v13  ;;  %v1157_v19 = vmul.f32 %v2607_v54, %v2607_v54  ;;  %v1158_v1 = vmul.f32 %v2609_v55, %v2609_v55 }
 0x91b   :  { %v2615_v20 = vsub.f32 %v1115_v53, %v1143_v14  ;;  %v2617_v29 = vsub.f32 %v1118_v61, %v1144_v16  ;;  %1169 = vadd.xlane.f32.xlu0 %v1157_v19  ;;  %1171 = vadd.xlane.f32.xlu1 %v1158_v1 }
 0x91d   :  { %v1159_v22 = vmul.f32 %v2615_v20, %v2615_v20  ;;  %v1160_v31 = vmul.f32 %v2617_v29, %v2617_v29 }
 0x91f   :  { %1173 = vadd.xlane.f32.xlu0 %v1159_v22  ;;  %1175 = vadd.xlane.f32.xlu1 %v1160_v31 }
 0x930   :  { %1258 = vperm.xlu1 %1980, %v2517_v50  }
 0x934   :  { %1262 = vperm.xlu1 %1980, %v2522_v51  }
 0x938   :  { %1266 = vperm.xlu1 %1980, %v2534_v26  }
 0x93c   :  { %1270 = vperm.xlu1 %1980, %v2529_v58  }
 0x940   :  { %1274 = vperm.xlu1 %1980, %v2546_v28  }
 0x944   :  { %1981 = vset.pattern.permute.xlu1 %v2127_v32 }
 0x99e   :  { %v1162_v2 = vpop.xlane.xlu0 %1161 }
 0x99f   :  { %v1177_v21 = vmul.f32 0.0078125, %v1162_v2 }
 0x9a0   :  { %v1164_v34 = vpop.xlane.xlu1 %1163 }
 0x9a1   :  { %v1185_v27 = vadd.f32 1e-05, %v1177_v21  ;;  %v1178_v49 = vmul.f32 0.0078125, %v1164_v34 }
 0x9a3   :  { %2029 = vrsqrt.f32 %v1185_v27  ;;  %v1186_v41 = vadd.f32 1e-05, %v1178_v49 }
 0x9a4   :  { %v1166_v40 = vpop.xlane.xlu0 %1165  ;;  %v1168_v23 = vpop.xlane.xlu1 %1167 }
 0x9a5   :  { %v1179_v43 = vmul.f32 0.0078125, %v1166_v40  ;;  %v1180_v45 = vmul.f32 0.0078125, %v1168_v23 }
 0x9a7   :  { %v1187_v47 = vadd.f32 1e-05, %v1179_v43  ;;  %v1188_v48 = vadd.f32 1e-05, %v1180_v45 }
 0x9a8   :  { %v1170_v37 = vpop.xlane.xlu0 %1169  ;;  %v1172_v39 = vpop.xlane.xlu1 %1171 }
 0x9a9   :  { %2031 = vrsqrt.f32 %v1187_v47  ;;  %v1182_v24 = vmul.f32 0.0078125, %v1172_v39  ;;  %v1181_v42 = vmul.f32 0.0078125, %v1170_v37 }
 0x9aa   :  { %2033 = vrsqrt.f32 %v1188_v48 }
 0x9ab   :  { %v1190_v56 = vadd.f32 1e-05, %v1182_v24  ;;  %v1189_v52 = vadd.f32 1e-05, %v1181_v42 }
 0x9ac   :  { %v1174_v57 = vpop.xlane.xlu0 %1173  ;;  %v1176_v0 = vpop.xlane.xlu1 %1175 }
 0x9ad   :  { %v2030_v53 = vpop.eup %2029  ;;  %v1183_v61 = vmul.f32 0.0078125, %v1174_v57  ;;  %2035 = vrsqrt.f32 %v1190_v56  ;;  %v1184_v30 = vmul.f32 0.0078125, %v1176_v0 }
 0x9ae   :  { %v1201_v36 = vmul.f32 %v2030_v53, %v2517_v50  ;;  %2037 = vrsqrt.f32 %v1186_v41 }
 0x9af   :  { %v1191_v63 = vadd.f32 1e-05, %v1183_v61  ;;  %v1192_v25 = vadd.f32 1e-05, %v1184_v30 }
 0x9b0   :  { %1211 = vperm.xlu0 %1982, %v1201_v36   ;;  %v1259_v1 = vpop.permute.xlu1 %1258 }
 0x9b1   :  { %2039 = vrsqrt.f32 %v1191_v63 }
 0x9b2   :  { %2041 = vrsqrt.f32 %v1189_v52 }
 0x9b3   :  { %v2032_v7 = vpop.eup %2031  ;;  %2043 = vrsqrt.f32 %v1192_v25 }
 0x9b4   :  { %1983 = vset.pattern.permute.xlu0 %v2126_v35  ;;  %v1203_v62 = vmul.f32 %v2032_v7, %v2534_v26  ;;  %v2034_v33 = vpop.eup %2033  ;;  %v1263_v22 = vpop.permute.xlu1 %1262 }
 0x9b5   :  { %1278 = vperm.xlu0 %1983, %v2541_v5   ;;  %v1204_v10 = vmul.f32 %v2034_v33, %v2529_v58 }
 0x9b6   :  { %1221 = vperm.xlu1 %1981, %v1203_v62  }
 0x9b7   :  { %v2036_v38 = vpop.eup %2035 }
 0x9b8   :  { %v2038_v9 = vpop.eup %2037  ;;  %v1206_v12 = vmul.f32 %v2036_v38, %v2541_v5  ;;  %v1267_v31 = vpop.permute.xlu1 %1266 }
 0x9b9   :  { %1984 = vset.pattern.permute.xlu0 %v2127_v32  ;;  %v1202_v15 = vmul.f32 %v2038_v9, %v2522_v51 }
 0x9ba   :  { %1226 = vperm.xlu1 %1981, %v1204_v10   ;;  %1236 = vperm.xlu0 %1984, %v1206_v12  }
 0x9bb   :  { %v2040_v11 = vpop.eup %2039 }
 0x9bc   :  { %v1207_v60 = vmul.f32 %v2040_v11, %v2558_v6  ;;  %v2042_v13 = vpop.eup %2041  ;;  %v1271_v32 = vpop.permute.xlu1 %1270 }
 0x9bd   :  { %v1205_v14 = vmul.f32 %v2042_v13, %v2546_v28  ;;  %v2044_v16 = vpop.eup %2043 }
 0x9be   :  { %1216 = vperm.xlu1 %1981, %v1202_v15   ;;  %1985 = vset.pattern.permute.xlu0 %v2126_v35  ;;  %v1208_v19 = vmul.f32 %v2044_v16, %v2553_v59 }
 0x9bf   :  { %1282 = vperm.xlu0 %1985, %v2558_v6  }
 0x9c0   :  { %v1275_v34 = vpop.permute.xlu1 %1274 }
 0x9c2   :  { %1241 = vperm.xlu1 %1981, %v1207_v60  }
 0x9c6   :  { %1231 = vperm.xlu1 %1981, %v1205_v14  }
 0x9ca   :  { %1246 = vperm.xlu1 %1981, %v1208_v19   ;;  %v2003_v19 = vld [vmem:[%s2883_s4 + $0x4] ss:$8 sps:$4 sm:$0xff]  }
 0x9cb   :  { %1810 = vmatprep.mubr.msk.bf16.mxu1 %vm1489_vm9, %v2003_v19 }
 0x9ce   :  { %1986 = vset.pattern.permute.xlu1 %v2126_v35 }
 0x9cf   :  { %1286 = vperm.xlu1 %1986, %v2553_v59  }
 0xa2f   :  { %v1212_v2 = vpop.permute.xlu0 %1211 }
 0xa30   :  { %v1249_v21 = vmul.f32 %v1212_v2, %v2591_v3 }
 0xa32   :  { %v1289_v27 = vadd.f32 %v1259_v1, %v1249_v21  ;;  %v2128_v1 = vmov 9  }
 0xa33   :  { %1987 = vset.pattern.permute.xlu0 %v2128_v1  ;;  %1988 = vset.pattern.permute.xlu1 %v2128_v1 }
 0xa34   :  { %v1297_v40 = vmul.f32 0.3, %v1289_v27  ;;  %v1279_v49 = vpop.permute.xlu0 %1278 }
 0xa35   :  { %v1222_v23 = vpop.permute.xlu1 %1221 }
 0xa36   :  { %v2643_v43 = vmax.f32 %v1289_v27, %v1297_v40  ;;  %v1251_v45 = vmul.f32 %v1222_v23, %v2601_v8 }
 0xa38   :  { %v1291_v47 = vadd.f32 %v1267_v31, %v1251_v45  ;;  %1321 = vrot.lane.b32.xlu0 %v2643_v43, %s2119_s20 }
 0xa39   :  { %v1227_v35 = vpop.permute.xlu1 %1226  ;;  %v1237_v24 = vpop.permute.xlu0 %1236 }
 0xa3a   :  { %v1299_v48 = vmul.f32 0.3, %v1291_v47  ;;  %v1252_v37 = vmul.f32 %v1227_v35, %v2597_v46  ;;  %v1254_v8 = vmul.f32 %v1237_v24, %v2609_v55 }
 0xa3c   :  { %v2649_v39 = vmax.f32 %v1291_v47, %v1299_v48  ;;  %v1292_v3 = vadd.f32 %v1271_v32, %v1252_v37  ;;  %v1294_v63 = vadd.f32 %v1279_v49, %v1254_v8 }
 0xa3d   :  { %v1217_v41 = vpop.permute.xlu1 %1216 }
 0xa3e   :  { %v1300_v56 = vmul.f32 0.3, %v1292_v3  ;;  %v1250_v57 = vmul.f32 %v1217_v41, %v2593_v44  ;;  %1325 = vrot.lane.b32.xlu0 %v2649_v39, %s2119_s20  ;;  %v1283_v52 = vpop.permute.xlu0 %1282  ;;  %v1302_v62 = vmul.f32 0.3, %v1294_v63 }
 0xa40   :  { %v2655_v53 = vmax.f32 %v1292_v3, %v1300_v56  ;;  %v1290_v61 = vadd.f32 %v1263_v22, %v1250_v57  ;;  %v2669_v9 = vmax.f32 %v1294_v63, %v1302_v62 }
 0xa41   :  { %v1242_v36 = vpop.permute.xlu1 %1241 }
 0xa42   :  { %v1298_v42 = vmul.f32 0.3, %v1290_v61  ;;  %v1414_v46 = vpack.c.bf16 %v2655_v53, %v2649_v39  ;;  %v1255_v7 = vmul.f32 %v1242_v36, %v2615_v20 }
 0xa44   :  { %v2659_v0 = vmax.f32 %v1290_v61, %v1298_v42  ;;  %v1295_v33 = vadd.f32 %v1283_v52, %v1255_v7 }
 0xa45   :  { %v1232_v44 = vpop.permute.xlu1 %1231 }
 0xa46   :  { %v1253_v30 = vmul.f32 %v1232_v44, %v2607_v54  ;;  %1323 = vrot.lane.b32.xlu1 %v2659_v0, %s2119_s20  ;;  %v1413_v55 = vpack.c.bf16 %v2659_v0, %v2643_v43  ;;  %v1303_v20 = vmul.f32 0.3, %v1295_v33 }
 0xa48   :  { %v1293_v25 = vadd.f32 %v1275_v34, %v1253_v30  ;;  %v2680_v13 = vmax.f32 %v1295_v33, %v1303_v20 }
 0xa49   :  { %v1247_v38 = vpop.permute.xlu1 %1246 }
 0xa4a   :  { %v1301_v10 = vmul.f32 0.3, %v1293_v25  ;;  %1327 = vrot.lane.b32.xlu1 %v2655_v53, %s2119_s20  ;;  %v1256_v54 = vmul.f32 %v1247_v38, %v2617_v29 }
 0xa4c   :  { %v2671_v12 = vmax.f32 %v1293_v25, %v1301_v10 }
 0xa4e   :  { %1331 = vrot.lane.b32.xlu1 %v2669_v9, %s2119_s20  ;;  %1329 = vrot.lane.b32.xlu0 %v2671_v12, %s2119_s20  ;;  %v1287_v15 = vpop.permute.xlu1 %1286  ;;  %v1415_v11 = vpack.c.bf16 %v2669_v9, %v2671_v12 }
 0xa4f   :  { %v1296_v60 = vadd.f32 %v1287_v15, %v1256_v54 }
 0xa51   :  { %v1304_v14 = vmul.f32 0.3, %v1296_v60 }
 0xa52   :  { %1333 = vrot.lane.b32.xlu0 %v2680_v13, %s2119_s20 }
 0xa53   :  { %v2684_v16 = vmax.f32 %v1296_v60, %v1304_v14 }
 0xa55   :  { %1335 = vrot.lane.b32.xlu1 %v2684_v16, %s2119_s20  ;;  %v1416_v29 = vpack.c.bf16 %v2684_v16, %v2680_v13 }
 0xa56   :  { %1361 = vrot.lane.b32.xlu0 %v2643_v43, %s2121_s0 }
 0xa59   :  { %1363 = vrot.lane.b32.xlu1 %v2659_v0, %s2121_s0 }
 0xa5a   :  { %1365 = vrot.lane.b32.xlu0 %v2649_v39, %s2121_s0 }
 0xa5d   :  { %1367 = vrot.lane.b32.xlu1 %v2655_v53, %s2121_s0 }
 0xa5e   :  { %1369 = vrot.lane.b32.xlu0 %v2671_v12, %s2121_s0 }
 0xa61   :  { %1371 = vrot.lane.b32.xlu1 %v2669_v9, %s2121_s0 }
 0xa62   :  { %1373 = vrot.lane.b32.xlu0 %v2680_v13, %s2121_s0 }
 0xa65   :  { %1375 = vrot.lane.b32.xlu1 %v2684_v16, %s2121_s0 }
 0xa66   :  { %1422 = vperm.xlu0 %1987, %v2517_v50  }
 0xa69   :  { %1426 = vperm.xlu1 %1988, %v2522_v51  }
 0xa6a   :  { %1434 = vperm.xlu0 %1987, %v2529_v58  }
 0xa6d   :  { %1430 = vperm.xlu1 %1988, %v2534_v26  }
 0xa6e   :  { %1442 = vperm.xlu0 %1987, %v2541_v5  }
 0xa71   :  { %1438 = vperm.xlu1 %1988, %v2546_v28  }
 0xa72   :  { %1450 = vperm.xlu0 %1987, %v2553_v59  }
 0xa75   :  { %1446 = vperm.xlu1 %1988, %v2558_v6  }
 0xaaa   :  { %v1322_v22 = vpop.permute.xlu0 %1321 }
 0xaab   :  { %v1345_v31 = vsel %vm111_vm3, 0.0, %v1322_v22 }
 0xaac   :  { %v1353_v34 = vmul.f32 %v2209_v17, %v1345_v31  ;;  %v2001_v31 = vld [vmem:[%s2883_s4] ss:$8 sps:$4 sm:$0xff]  }
 0xab0   :  { %v1326_v32 = vpop.permute.xlu0 %1325 }
 0xab1   :  { %v1347_v40 = vsel %vm111_vm3, 0.0, %v1326_v32  ;;  %v2004_v32 = vld [vmem:[%s2883_s4 + $0x14] ss:$8 sps:$4 sm:$0xff]  }
 0xab2   :  { %v1355_v47 = vmul.f32 %v2209_v17, %v1347_v40 }
 0xab8   :  { %v1324_v2 = vpop.permute.xlu1 %1323 }
 0xab9   :  { %v1346_v21 = vsel %vm111_vm3, 0.0, %v1324_v2  ;;  %v2009_v2 = vld [vmem:[%s2883_s4 + $0x20] ss:$8 sps:$4 sm:$0xff]  }
 0xaba   :  { %v1354_v27 = vmul.f32 %v2209_v17, %v1346_v21  ;;  %v2010_v21 = vld [vmem:[%s2883_s4 + $0x34] ss:$8 sps:$4 sm:$0xff]  }
 0xabc   :  { %v1328_v23 = vpop.permute.xlu1 %1327  ;;  %v1409_v45 = vpack.c.bf16 %v1354_v27, %v1353_v34  ;;  %v2012_v34 = vld [vmem:[%s2883_s4 + $0x30] ss:$8 sps:$4 sm:$0xff]  }
 0xabd   :  { %v1348_v49 = vsel %vm111_vm3, 0.0, %v1328_v23 }
 0xabe   :  { %v1356_v6 = vmul.f32 %v2209_v17, %v1348_v49  ;;  %1503 = vmatpush1.bf16.msra.mxu1 %v1409_v45 }
 0xabf   :  { %1504 = vmatprep.subr.bf16.mxu1 %v2118_v4 }
 0xac0   :  { %v1410_v35 = vpack.c.bf16 %v1356_v6, %v1355_v47  ;;  %v1330_v48 = vpop.permute.xlu0 %1329  ;;  %v1332_v37 = vpop.permute.xlu1 %1331 }
 0xac1   :  { %v1349_v3 = vsel %vm111_vm3, 0.0, %v1330_v48  ;;  %v1350_v24 = vsel %vm111_vm3, 0.0, %v1332_v37 }
 0xac2   :  { %v1357_v41 = vmul.f32 %v2209_v17, %v1349_v3  ;;  %v1358_v56 = vmul.f32 %v2209_v17, %v1350_v24  ;;  %1505 = vmatpush1.bf16.msra.mxu1 %v1410_v35 }
 0xac3   :  { %1506 = vmatprep.subr.bf16.mxu1 %v2118_v4 }
 0xac4   :  { %v1411_v57 = vpack.c.bf16 %v1358_v56, %v1357_v41  ;;  %v1334_v8 = vpop.permute.xlu0 %1333 }
 0xac5   :  { %v1351_v61 = vsel %vm111_vm3, 0.0, %v1334_v8 }
 0xac6   :  { %1507 = vmatpush1.bf16.msra.mxu1 %v1411_v57  ;;  %v1359_v63 = vmul.f32 %v2209_v17, %v1351_v61 }
 0xac7   :  { %v1336_v36 = vpop.permute.xlu1 %1335  ;;  %1508 = vmatprep.subr.bf16.mxu1 %v2118_v4 }
 0xac8   :  { %v1352_v42 = vsel %vm111_vm3, 0.0, %v1336_v36  ;;  %v1362_v30 = vpop.permute.xlu0 %1361 }
 0xac9   :  { %v1360_v7 = vmul.f32 %v2209_v17, %v1352_v42  ;;  %v1385_v25 = vsel %vm122_vm6, %v1362_v30, 0.0 }
 0xaca   :  { %v1393_v39 = vmul.f32 %v2211_v18, %v1385_v25 }
 0xacb   :  { %v1412_v52 = vpack.c.bf16 %v1360_v7, %v1359_v63  ;;  %v1364_v44 = vpop.permute.xlu1 %1363 }
 0xacc   :  { %v1366_v17 = vpop.permute.xlu0 %1365  ;;  %v1386_v33 = vsel %vm122_vm6, %v1364_v44, 0.0 }
 0xacd   :  { %1509 = vmatpush1.bf16.msra.mxu1 %v1412_v52  ;;  %v1394_v43 = vmul.f32 %v2211_v18, %v1386_v33 }
 0xace   :  { %1510 = vmatprep.subr.bf16.mxu1 %v2118_v4 }
 0xacf   :  { %v1368_v62 = vpop.permute.xlu1 %1367  ;;  %v1417_v38 = vpack.c.bf16 %v1394_v43, %v1393_v39 }
 0xad0   :  { %v1370_v53 = vpop.permute.xlu0 %1369 }
 0xad1   :  { %1511 = vmatpush1.bf16.msra.mxu1 %v1413_v55  ;;  %v1388_v55 = vsel %vm122_vm6, %v1368_v62, 0.0  ;;  %v1389_v54 = vsel %vm122_vm6, %v1370_v53, 0.0  ;;  %v2129_v53 = vmov 11  }
 0xad2   :  { %1512 = vmatprep.subr.bf16.mxu1 %v2118_v4  ;;  %v1396_v10 = vmul.f32 %v2211_v18, %v1388_v55  ;;  %v1397_v14 = vmul.f32 %v2211_v18, %v1389_v54  ;;  %1990 = vset.pattern.permute.xlu1 %v2129_v53 }
 0xad3   :  { %v1372_v0 = vpop.permute.xlu1 %1371  ;;  %1989 = vset.pattern.permute.xlu0 %v2129_v53 }
 0xad4   :  { %v1390_v9 = vsel %vm122_vm6, %v1372_v0, 0.0  ;;  %v1374_v60 = vpop.permute.xlu0 %1373 }
 0xad5   :  { %1513 = vmatpush1.bf16.msra.mxu1 %v1414_v46  ;;  %v1387_v46 = vsel %vm122_vm6, %v1366_v17, 0.0  ;;  %v1391_v16 = vsel %vm122_vm6, %v1374_v60, 0.0 }
 0xad6   :  { %1514 = vmatprep.subr.bf16.mxu1 %v2118_v4  ;;  %v1395_v20 = vmul.f32 %v2211_v18, %v1387_v46  ;;  %v1399_v1 = vmul.f32 %v2211_v18, %v1391_v16 }
 0xad7   :  { %v1376_v12 = vpop.permute.xlu1 %1375 }
 0xad8   :  { %v1418_v15 = vpack.c.bf16 %v1396_v10, %v1395_v20  ;;  %v1392_v13 = vsel %vm122_vm6, %v1376_v12, 0.0 }
 0xad9   :  { %1515 = vmatpush1.bf16.msra.mxu1 %v1415_v11  ;;  %v1398_v11 = vmul.f32 %v2211_v18, %v1390_v9  ;;  %v1400_v19 = vmul.f32 %v2211_v18, %v1392_v13  ;;  %v2006_v18 = vld [vmem:[%s2883_s4 + $0x10] ss:$8 sps:$4 sm:$0xff]  }
 0xada   :  { %1516 = vmatprep.subr.bf16.mxu1 %v2118_v4 }
 0xadb   :  { %v1420_v22 = vpack.c.bf16 %v1400_v19, %v1399_v1 }
 0xadd   :  { %1517 = vmatpush1.bf16.msra.mxu1 %v1416_v29  ;;  %v1419_v29 = vpack.c.bf16 %v1398_v11, %v1397_v14 }
 0xade   :  { %1518 = vmatprep.subr.bf16.mxu1 %v2118_v4 }
 0xae1   :  { %1519 = vmatpush1.bf16.msra.mxu1 %v1417_v38 }
 0xae2   :  { %1520 = vmatprep.subr.bf16.mxu1 %v2118_v4 }
 0xae5   :  { %1521 = vmatpush1.bf16.msra.mxu1 %v1418_v15  ;;  %v1423_v27 = vpop.permute.xlu0 %1422 }
 0xae6   :  { %1522 = vmatprep.subr.bf16.mxu1 %v2118_v4 }
 0xae8   :  { %v1427_v49 = vpop.permute.xlu1 %1426 }
 0xae9   :  { %1523 = vmatpush1.bf16.msra.mxu1 %v1419_v29  ;;  %v1435_v41 = vpop.permute.xlu0 %1434 }
 0xaea   :  { %1524 = vmatprep.subr.bf16.mxu1 %v2118_v4  ;;  %v2007_v4 = vld [vmem:[%s2883_s4 + $0x24] ss:$8 sps:$4 sm:$0xff]  }
 0xaec   :  { %v1431_v48 = vpop.permute.xlu1 %1430 }
 0xaed   :  { %1525 = vmatpush1.bf16.msra.mxu1 %v1420_v22  ;;  %v1443_v7 = vpop.permute.xlu0 %1442 }
 0xaf0   :  { %1535 = vmatmul.mubr.bf16.vlgmr.msra.gmra.mrb[0].mxu1 %v2001_v31  ;;  %v1439_v61 = vpop.permute.xlu1 %1438 }
 0xaf1   :  { %1811 = vmatprep.mubr.msk.bf16.mxu1 %vm1489_vm9, %v2004_v32  ;;  %v1451_v43 = vpop.permute.xlu0 %1450 }
 0xaf4   :  { %v1447_v62 = vpop.permute.xlu1 %1446 }
 0xaf8   :  { %1543 = vmatmul.mubr.bf16.gmra.mrb[4].mxu1 %v2006_v18 }
 0xaf9   :  { %1812 = vmatprep.mubr.msk.bf16.mxu1 %vm1489_vm9, %v2007_v4 }
 0xb00   :  { %1551 = vmatmul.mubr.bf16.gmra.mrb[8].mxu1 %v2009_v2 }
 0xb01   :  { %1813 = vmatprep.mubr.msk.bf16.mxu1 %vm1489_vm9, %v2010_v21 }
 0xb08   :  { %1559 = vmatmul.mubr.bf16.gmra.mrb[12].mxu1 %v2012_v34 }
 0xbc3   :  { %v1536_v40 = vpop.f32.mrb[0].mxu1 }
 0xbc4   :  { %v1537_v23 = vadd.f32 %v1536_v40, %v1423_v27  ;;  %v1538_v45 = vpop.f32.mrb[1].mxu1 }
 0xbc5   :  { %v1539_v47 = vpop.f32.mrb[2].mxu1 }
 0xbc6   :  { %v1540_v6 = vadd.f32 %v1539_v47, %v1427_v49  ;;  %v1541_v35 = vpop.f32.mrb[3].mxu1  ;;  %1567 = vadd.xlane.f32.xlu1 %v1537_v23 }
 0xbc8   :  { %1569 = vadd.xlane.f32.xlu0 %v1540_v6 }
 0xbcb   :  { %v1544_v37 = vpop.f32.mrb[4].mxu1 }
 0xbcc   :  { %v1545_v3 = vadd.f32 %v1544_v37, %v1431_v48  ;;  %v1546_v24 = vpop.f32.mrb[5].mxu1  ;;  %v2130_v48 = vmov 10  }
 0xbcd   :  { %v1547_v56 = vpop.f32.mrb[6].mxu1 }
 0xbce   :  { %v1548_v57 = vadd.f32 %v1547_v56, %v1435_v41  ;;  %v1549_v8 = vpop.f32.mrb[7].mxu1  ;;  %1571 = vadd.xlane.f32.xlu0 %v1545_v3 }
 0xbd0   :  { %1573 = vadd.xlane.f32.xlu1 %v1548_v57 }
 0xbd3   :  { %v1552_v36 = vpop.f32.mrb[8].mxu1 }
 0xbd4   :  { %v1553_v42 = vadd.f32 %v1552_v36, %v1439_v61  ;;  %v1554_v63 = vpop.f32.mrb[9].mxu1 }
 0xbd5   :  { %v1555_v52 = vpop.f32.mrb[10].mxu1 }
 0xbd6   :  { %v1556_v44 = vadd.f32 %v1555_v52, %v1443_v7  ;;  %v1557_v30 = vpop.f32.mrb[11].mxu1  ;;  %1575 = vadd.xlane.f32.xlu0 %v1553_v42 }
 0xbd8   :  { %1577 = vadd.xlane.f32.xlu1 %v1556_v44 }
 0xbdb   :  { %v1560_v17 = vpop.f32.mrb[12].mxu1 }
 0xbdc   :  { %v1561_v33 = vadd.f32 %v1560_v17, %v1447_v62  ;;  %v1562_v25 = vpop.f32.mrb[13].mxu1 }
 0xbdd   :  { %v1563_v0 = vpop.f32.mrb[14].mxu1 }
 0xbde   :  { %v1564_v55 = vadd.f32 %v1563_v0, %v1451_v43  ;;  %v1565_v39 = vpop.f32.mrb[15].mxu1  ;;  %1579 = vadd.xlane.f32.xlu0 %v1561_v33 }
 0xbe0   :  { %1581 = vadd.xlane.f32.xlu1 %v1564_v55 }
 0xc53   :  { %v1568_v46 = vpop.xlane.xlu1 %1567 }
 0xc54   :  { %v1583_v38 = vmul.f32 0.0078125, %v1568_v46 }
 0xc55   :  { %v1570_v10 = vpop.xlane.xlu0 %1569 }
 0xc56   :  { %v2799_v9 = vsub.f32 %v1537_v23, %v1583_v38  ;;  %v1584_v20 = vmul.f32 0.0078125, %v1570_v10 }
 0xc58   :  { %v2801_v12 = vsub.f32 %v1540_v6, %v1584_v20  ;;  %v1599_v54 = vmul.f32 %v2799_v9, %v2799_v9 }
 0xc5a   :  { %1607 = vadd.xlane.f32.xlu0 %v1599_v54  ;;  %v1600_v15 = vmul.f32 %v2801_v12, %v2801_v12 }
 0xc5b   :  { %v1572_v11 = vpop.xlane.xlu0 %1571 }
 0xc5c   :  { %v1585_v60 = vmul.f32 0.0078125, %v1572_v11  ;;  %1609 = vadd.xlane.f32.xlu1 %v1600_v15 }
 0xc5d   :  { %v1574_v13 = vpop.xlane.xlu1 %1573 }
 0xc5e   :  { %v2807_v14 = vsub.f32 %v1545_v3, %v1585_v60  ;;  %v1586_v16 = vmul.f32 0.0078125, %v1574_v13 }
 0xc60   :  { %v2809_v29 = vsub.f32 %v1548_v57, %v1586_v16  ;;  %v1601_v19 = vmul.f32 %v2807_v14, %v2807_v14 }
 0xc62   :  { %1611 = vadd.xlane.f32.xlu0 %v1601_v19  ;;  %v1602_v1 = vmul.f32 %v2809_v29, %v2809_v29 }
 0xc63   :  { %v1576_v22 = vpop.xlane.xlu0 %1575 }
 0xc64   :  { %v1587_v31 = vmul.f32 0.0078125, %v1576_v22  ;;  %1613 = vadd.xlane.f32.xlu1 %v1602_v1  ;;  %v2064_v22 = vld [vmem:[%s2884_s5 + $0x38] sm:$0xff] }
 0xc65   :  { %v1578_v32 = vpop.xlane.xlu1 %1577 }
 0xc66   :  { %v2815_v18 = vsub.f32 %v1553_v42, %v1587_v31  ;;  %v1588_v4 = vmul.f32 0.0078125, %v1578_v32 }
 0xc68   :  { %v2817_v2 = vsub.f32 %v1556_v44, %v1588_v4  ;;  %v1603_v21 = vmul.f32 %v2815_v18, %v2815_v18 }
 0xc6a   :  { %1615 = vadd.xlane.f32.xlu0 %v1603_v21  ;;  %v1604_v34 = vmul.f32 %v2817_v2, %v2817_v2 }
 0xc6b   :  { %v1580_v27 = vpop.xlane.xlu0 %1579 }
 0xc6c   :  { %v1589_v40 = vmul.f32 0.0078125, %v1580_v27  ;;  %1617 = vadd.xlane.f32.xlu1 %v1604_v34 }
 0xc6d   :  { %v1582_v23 = vpop.xlane.xlu1 %1581 }
 0xc6e   :  { %v2823_v45 = vsub.f32 %v1561_v33, %v1589_v40  ;;  %v1590_v49 = vmul.f32 0.0078125, %v1582_v23 }
 0xc70   :  { %v2825_v47 = vsub.f32 %v1564_v55, %v1590_v49  ;;  %v1605_v6 = vmul.f32 %v2823_v45, %v2823_v45 }
 0xc72   :  { %1619 = vadd.xlane.f32.xlu0 %v1605_v6  ;;  %v1606_v35 = vmul.f32 %v2825_v47, %v2825_v47 }
 0xc74   :  { %1621 = vadd.xlane.f32.xlu1 %v1606_v35 }
 0xc85   :  { %1708 = vperm.xlu1 %1990, %v2522_v51  }
 0xc88   :  { %1704 = vperm.xlu0 %1989, %v2517_v50  }
 0xc89   :  { %1712 = vperm.xlu1 %1990, %v2534_v26  }
 0xc8c   :  { %1716 = vperm.xlu0 %1989, %v2529_v58  }
 0xc8d   :  { %1720 = vperm.xlu1 %1990, %v2546_v28  }
 0xc90   :  { %1724 = vperm.xlu0 %1989, %v2541_v5  }
 0xc91   :  { %1992 = vset.pattern.permute.xlu1 %v2130_v48 }
 0xc94   :  { %1991 = vset.pattern.permute.xlu0 %v2130_v48 }
 0xce7   :  { %v1608_v37 = vpop.xlane.xlu0 %1607 }
 0xce8   :  { %v1623_v3 = vmul.f32 0.0078125, %v1608_v37 }
 0xce9   :  { %v1610_v24 = vpop.xlane.xlu1 %1609 }
 0xcea   :  { %v1631_v41 = vadd.f32 1e-05, %v1623_v3  ;;  %v1624_v56 = vmul.f32 0.0078125, %v1610_v24 }
 0xcec   :  { %2045 = vrsqrt.f32 %v1631_v41  ;;  %v1632_v57 = vadd.f32 1e-05, %v1624_v56 }
 0xcee   :  { %2047 = vrsqrt.f32 %v1632_v57 }
 0xcef   :  { %v1612_v8 = vpop.xlane.xlu0 %1611 }
 0xcf0   :  { %v1625_v61 = vmul.f32 0.0078125, %v1612_v8 }
 0xcf1   :  { %v1614_v36 = vpop.xlane.xlu1 %1613 }
 0xcf2   :  { %v1633_v42 = vadd.f32 1e-05, %v1625_v61  ;;  %v1626_v63 = vmul.f32 0.0078125, %v1614_v36 }
 0xcf4   :  { %2049 = vrsqrt.f32 %v1633_v42  ;;  %v1634_v28 = vadd.f32 1e-05, %v1626_v63 }
 0xcf6   :  { %v2046_v7 = vpop.eup %2045  ;;  %2051 = vrsqrt.f32 %v1634_v28 }
 0xcf7   :  { %v1616_v5 = vpop.xlane.xlu0 %1615  ;;  %v1647_v52 = vmul.f32 %v2046_v7, %v2517_v50 }
 0xcf8   :  { %v2048_v44 = vpop.eup %2047  ;;  %v1627_v30 = vmul.f32 0.0078125, %v1616_v5 }
 0xcf9   :  { %1657 = vperm.xlu0 %1991, %v1647_v52   ;;  %v1618_v62 = vpop.xlane.xlu1 %1617  ;;  %v1648_v17 = vmul.f32 %v2048_v44, %v2522_v51 }
 0xcfa   :  { %v1635_v33 = vadd.f32 1e-05, %v1627_v30  ;;  %v1628_v25 = vmul.f32 0.0078125, %v1618_v62 }
 0xcfb   :  { %1662 = vperm.xlu1 %1992, %v1648_v17  }
 0xcfc   :  { %2053 = vrsqrt.f32 %v1635_v33  ;;  %v1636_v43 = vadd.f32 1e-05, %v1628_v25 }
 0xcfd   :  { %1994 = vset.pattern.permute.xlu0 %v2129_v53 }
 0xcfe   :  { %v2050_v0 = vpop.eup %2049  ;;  %2055 = vrsqrt.f32 %v1636_v43  ;;  %1732 = vperm.xlu0 %1994, %v2553_v59   ;;  %v2061_v59 = vld [vmem:[%s2884_s5 + $0x20] sm:$0xff] }
 0xcff   :  { %v1620_v55 = vpop.xlane.xlu0 %1619  ;;  %v1649_v50 = vmul.f32 %v2050_v0, %v2534_v26  ;;  %v2062_v26 = vld [vmem:[%s2884_s5 + $0x28] sm:$0xff] }
 0xd00   :  { %v2052_v39 = vpop.eup %2051  ;;  %v1629_v46 = vmul.f32 0.0078125, %v1620_v55 }
 0xd01   :  { %1667 = vperm.xlu1 %1992, %v1649_v50   ;;  %v1622_v38 = vpop.xlane.xlu1 %1621  ;;  %v1650_v20 = vmul.f32 %v2052_v39, %v2529_v58  ;;  %v2063_v58 = vld [vmem:[%s2884_s5 + $0x30] sm:$0xff]  ;;  %s2131_s5 = smov [#allocation5]  }
 0xd02   :  { %v1637_v10 = vadd.f32 1e-05, %v1629_v46  ;;  %v1630_v51 = vmul.f32 0.0078125, %v1622_v38  ;;  %s1772_s13 = sshll.u32 %s2131_s5, 4  ;;  %s1773_s13 = int_to_ptr.vmem [resolvable:$true] %s1772_s13 }
 0xd03   :  { %s2087_s14 = scalar_lea.vmem %s1773_s13, 1024  ;;  %p2092_p9 = scmp.lt.s32.totalorder %s1773_s13, %s1773_s13 }
 0xd04   :  { %2057 = vrsqrt.f32 %v1637_v10  ;;  %v1638_v54 = vadd.f32 1e-05, %v1630_v51  ;;  %p2088_p8 = scmp.ne.s32.totalorder %s1773_s13, %s2087_s14  ;;  %p2093_p10 = scmp.lt.s32.totalorder %s2087_s14, %s2087_s14 }
 0xd05   :  { %1672 = vperm.xlu1 %1992, %v1650_v20   ;;  %v1709_v4 = vpop.permute.xlu1 %1708 }
 0xd06   :  { %v2054_v15 = vpop.eup %2053  ;;  %2059 = vrsqrt.f32 %v1638_v54  ;;  %p2094_p11 = por %p2093_p10, %p2092_p9 }
 0xd07   :  { %v1651_v11 = vmul.f32 %v2061_v59, %v2054_v15  ;;  %v1705_v32 = vpop.permute.xlu0 %1704 }
 0xd08   :  { %v2056_v60 = vpop.eup %2055  ;;  %p2095_p12 = pnand %p2094_p11, %p2088_p8 }
 0xd09   :  { %1677 = vperm.xlu1 %1992, %v1651_v11   ;;  %v1652_v13 = vmul.f32 %v2062_v26, %v2056_v60  ;;  %v1713_v34 = vpop.permute.xlu1 %1712 }
 0xd0b   :  { %v1717_v21 = vpop.permute.xlu0 %1716 }
 0xd0d   :  { %1682 = vperm.xlu1 %1992, %v1652_v13   ;;  %v1721_v40 = vpop.permute.xlu1 %1720 }
 0xd0e   :  { %v2058_v16 = vpop.eup %2057 }
 0xd0f   :  { %v1653_v19 = vmul.f32 %v2063_v58, %v2058_v16  ;;  %v1725_v27 = vpop.permute.xlu0 %1724 }
 0xd10   :  { %v2060_v1 = vpop.eup %2059 }
 0xd11   :  { %1687 = vperm.xlu1 %1992, %v1653_v19   ;;  %v1654_v31 = vmul.f32 %v2064_v22, %v2060_v1 }
 0xd15   :  { %1692 = vperm.xlu1 %1992, %v1654_v31  }
 0xd19   :  { %1993 = vset.pattern.permute.xlu1 %v2129_v53 }
 0xd1a   :  { %1728 = vperm.xlu1 %1993, %v2063_v58  }
 0xd78   :  { %v1658_v23 = vpop.permute.xlu0 %1657 }
 0xd79   :  { %v1695_v49 = vmul.f32 %v1658_v23, %v2799_v9 }
 0xd7a   :  { %v1663_v6 = vpop.permute.xlu1 %1662 }
 0xd7b   :  { %v1735_v35 = vadd.f32 %v1705_v32, %v1695_v49  ;;  %v1696_v48 = vmul.f32 %v1663_v6, %v2801_v12 }
 0xd7d   :  { %v1743_v37 = vmul.f32 0.3, %v1735_v35  ;;  %v1736_v3 = vadd.f32 %v1709_v4, %v1696_v48  ;;  %v1733_v0 = vpop.permute.xlu0 %1732 }
 0xd7f   :  { %v1751_v24 = vmax.f32 %v1735_v35, %v1743_v37  ;;  %v1744_v41 = vmul.f32 0.3, %v1736_v3 }
 0xd80   :  { %v1668_v56 = vpop.permute.xlu1 %1667 }
 0xd81   :  { %1759 = vst [vmem:[#allocation5] sm:$0xff] %v1751_v24  ;;  %v1752_v53 = vmax.f32 %v1736_v3, %v1744_v41  ;;  %v1697_v57 = vmul.f32 %v1668_v56, %v2807_v14 }
 0xd83   :  { %1760 = vst [vmem:[#allocation5 + $0x8] sm:$0xff] %v1752_v53  ;;  %v1737_v8 = vadd.f32 %v1713_v34, %v1697_v57 }
 0xd84   :  { %v1673_v61 = vpop.permute.xlu1 %1672 }
 0xd85   :  { %v1745_v36 = vmul.f32 0.3, %v1737_v8  ;;  %v1698_v42 = vmul.f32 %v1673_v61, %v2809_v29 }
 0xd87   :  { %v1753_v9 = vmax.f32 %v1737_v8, %v1745_v36  ;;  %v1738_v63 = vadd.f32 %v1717_v21, %v1698_v42 }
 0xd88   :  { %v1678_v28 = vpop.permute.xlu1 %1677 }
 0xd89   :  { %1761 = vst [vmem:[#allocation5 + $0x10] sm:$0xff] %v1753_v9  ;;  %v1746_v12 = vmul.f32 0.3, %v1738_v63  ;;  %v1699_v7 = vmul.f32 %v1678_v28, %v2815_v18 }
 0xd8b   :  { %v1754_v5 = vmax.f32 %v1738_v63, %v1746_v12  ;;  %v1739_v52 = vadd.f32 %v1721_v40, %v1699_v7 }
 0xd8c   :  { %v1683_v44 = vpop.permute.xlu1 %1682 }
 0xd8d   :  { %1762 = vst [vmem:[#allocation5 + $0x18] sm:$0xff] %v1754_v5  ;;  %v1747_v30 = vmul.f32 0.3, %v1739_v52  ;;  %v1700_v14 = vmul.f32 %v1683_v44, %v2817_v2 }
 0xd8f   :  { %v1755_v62 = vmax.f32 %v1739_v52, %v1747_v30  ;;  %v1740_v17 = vadd.f32 %v1725_v27, %v1700_v14 }
 0xd90   :  { %v1688_v33 = vpop.permute.xlu1 %1687 }
 0xd91   :  { %1763 = vst [vmem:[#allocation5 + $0x20] sm:$0xff] %v1755_v62  ;;  %v1748_v25 = vmul.f32 0.3, %v1740_v17  ;;  %v1701_v18 = vmul.f32 %v1688_v33, %v2823_v45 }
 0xd93   :  { %v1756_v29 = vmax.f32 %v1740_v17, %v1748_v25 }
 0xd94   :  { %v1693_v43 = vpop.permute.xlu1 %1692 }
 0xd95   :  { %1764 = vst [vmem:[#allocation5 + $0x28] sm:$0xff] %v1756_v29  ;;  %v1702_v55 = vmul.f32 %v1693_v43, %v2825_v47 }
 0xd97   :  { %v1742_v50 = vadd.f32 %v1733_v0, %v1702_v55 }
 0xd99   :  { %v1750_v39 = vmul.f32 0.3, %v1742_v50  ;;  %v1729_v46 = vpop.permute.xlu1 %1728 }
 0xd9a   :  { %v1741_v38 = vadd.f32 %v1729_v46, %v1701_v18 }
 0xd9b   :  { %v1758_v10 = vmax.f32 %v1742_v50, %v1750_v39 }
 0xd9c   :  { %v1749_v2 = vmul.f32 0.3, %v1741_v38 }
 0xd9d   :  { %1766 = vst [vmem:[#allocation5 + $0x38] sm:$0xff] %v1758_v10 }
 0xd9e   :  { %v1757_v51 = vmax.f32 %v1741_v38, %v1749_v2 }
 0xda0   :  { %1765 = vst [vmem:[#allocation5 + $0x30] sm:$0xff] %v1757_v51 }
 0xda1   :  { %2098 = shalt.err (!%p2095_p12)
}
 0xda2   :  { %s2099_s20 = scalar_lea.hbm %s2886_s7, 1024 }
 0xda3   :  { %p2100_p13 = scmp.ne.s32.totalorder %s2886_s7, %s2099_s20  ;;  %p2103_p0 = scmp.lt.u32.totalorder %s2099_s20, %s2886_s7 }
 0xda5   :  { %p2105_p1 = pnand %p2103_p0, %p2100_p13 }
 0xda7   :  { %2108 = shalt.err (!%p2105_p1)
}
 0xda8   :  { %1778 = dma.vmem_to_hbm [thread:$0]  %s1773_s13, 1024, %s2886_s7, [#allocation4], %s2114_s11, %s2114_s11, %s2115_s12  }
 0xda9   :  { %2111 = dma.done.wait [#allocation4], 1024  }
 0xdaa   :  { %2112 = vsyncadd [#allocation4], 4294966272 }
 0xdab   :  { %1782 = vsyncpa [#allocation3], 1 }
 0xdac   :  { %1783 = vsyncpa [#allocation4], 1 }

</bundles_post_ra>
